<compile_context>
chip_gen: v6e
topology: v6e:2x2x1
jax: 0.10.0
libtpu: 0.0.40
codegen_flags: <defaults>
</compile_context>

<pallas_src>
import functools

import numpy as np
import jax
import jax.numpy as jnp
from jax.experimental import pallas as pl
from jax.experimental.pallas import tpu as pltpu

# ---------------------------------------------------------------------------
# "irreps_in" config (already simplified): "4x0e + 4x1o + 2x2e"
#   D_in  = 4*1 + 4*3 + 2*5 = 26
#   D_out = 4 + 4 + 2       = 10
# Norm has no learnable parameters; the segment matrices below are the only
# (deterministic) constants the kernel needs.
# ---------------------------------------------------------------------------
IRREPS_IN = ((4, 0), (4, 1), (2, 2))   # (mul, l); parity is irrelevant here

_GROUP = 64                      # 64*26 = 1664 = 13*128 ; 64*10 = 640 = 5*128
_GROUPED_BLOCK_GROUPS = 1024     # 1024 group-rows = 65536 logical rows / step
_SIMPLE_BLOCK_ROWS = 8192        # simple (rows, 26) path (tail / opt-out)
_MIN_GRID_BLOCKS = 8             # >= ~4 blocks per TensorCore on 2-TC v7x
_VMEM_LIMIT_BYTES = 40 * 1024 * 1024


def irreps_dims(irreps):
    d_in = sum(mul * (2 * l + 1) for mul, l in irreps)
    d_out = sum(mul for mul, _ in irreps)
    return d_in, d_out


@functools.lru_cache(maxsize=None)
def _segment_matrix_np(irreps):
    """W[k, j] = 1 iff input component k belongs to output channel j."""
    d_in, d_out = irreps_dims(irreps)
    w = np.zeros((d_in, d_out), dtype=np.float32)
    k = j = 0
    for mul, l in irreps:
        dim = 2 * l + 1
        for _ in range(mul):
            w[k:k + dim, j] = 1.0
            k += dim
            j += 1
    return w


@functools.lru_cache(maxsize=None)
def _grouped_segment_matrix_np(irreps, group):
    """Block-diagonal W for `group` logical rows packed along the lane axis."""
    ws = _segment_matrix_np(irreps)
    d_in, d_out = ws.shape
    wg = np.zeros((group * d_in, group * d_out), dtype=np.float32)
    for g in range(group):
        wg[g * d_in:(g + 1) * d_in, g * d_out:(g + 1) * d_out] = ws
    return wg


def _pick_block(n_rows, target, align=8, min_blocks=_MIN_GRID_BLOCKS):
    """Row-tile: <= target, multiple of `align` (or the full extent)."""
    if n_rows <= align:
        return max(n_rows, 1)
    b = min(target, -(-n_rows // min_blocks))     # aim for >= min_blocks steps
    b = -(-b // align) * align                    # round up to multiple of 8
    return min(b, n_rows)                         # full extent is always legal


# ---------------------------------------------------------------------------
# Pallas kernel: out = sqrt((x * x) @ W)
# ---------------------------------------------------------------------------
def _norm_kernel(x_ref, w_ref, o_ref, *, precision):
    x = x_ref[...].astype(jnp.float32)
    sq = x * x                                     # VPU (exact in f32)
    w = w_ref[...]                                 # bf16 {0,1}, exact
    if precision == "float32":
        s = jnp.dot(sq, w.astype(jnp.float32), preferred_element_type=jnp.float32)
    elif precision == "bf16":
        # Fastest: single bf16 matmul, ~1e-3 relative error from rounding x^2.
        s = jnp.dot(sq.astype(jnp.bfloat16), w, preferred_element_type=jnp.float32)
    else:  # "hilo": near-f32 accuracy with bf16 MXU operands (2 matmuls)
        hi = sq.astype(jnp.bfloat16)
        lo = (sq - hi.astype(jnp.float32)).astype(jnp.bfloat16)
        s = (jnp.dot(hi, w, preferred_element_type=jnp.float32)
             + jnp.dot(lo, w, preferred_element_type=jnp.float32))
    o_ref[...] = jnp.sqrt(s).astype(o_ref.dtype)


def _norm_call(x2d, w_bf16, block_rows, precision):
    """sqrt((x2d * x2d) @ W), rows tiled along a 1-D 'parallel' grid."""
    n_rows, d_in = x2d.shape
    d_out = w_bf16.shape[1]
    block_rows = _pick_block(n_rows, block_rows)
    grid = pl.cdiv(n_rows, block_rows)             # ragged last block is masked
    n_matmuls = 2 if precision == "hilo" else 1
    itemsize = x2d.dtype.itemsize
    cost = pl.CostEstimate(
        flops=int(n_rows) * d_in * (1 + 2 * d_out * n_matmuls),
        transcendentals=int(n_rows) * d_out,
        bytes_accessed=(int(x2d.size) * itemsize
                        + int(n_rows) * d_out * itemsize
                        + int(w_bf16.size) * w_bf16.dtype.itemsize),
    )
    return pl.pallas_call(
        functools.partial(_norm_kernel, precision=precision),
        out_shape=jax.ShapeDtypeStruct((n_rows, d_out), x2d.dtype),
        grid_spec=pltpu.PrefetchScalarGridSpec(
            num_scalar_prefetch=0,
            grid=(grid,),
            in_specs=[
                pl.BlockSpec((block_rows, d_in), lambda i: (i, 0)),
                # Constant block index -> W is DMA'd once and stays resident.
                pl.BlockSpec((d_in, d_out), lambda i: (0, 0)),
            ],
            out_specs=pl.BlockSpec((block_rows, d_out), lambda i: (i, 0)),
        ),
        compiler_params=pltpu.CompilerParams(
            dimension_semantics=("parallel",),      # megacore-shardable (v7x)
            vmem_limit_bytes=_VMEM_LIMIT_BYTES,     # v5e default is only 16 MiB
        ),
        cost_estimate=cost,
    )(x2d, w_bf16)


def norm_forward(features, irreps=IRREPS_IN, *, use_grouped=None, precision="bf16"):
    """features: (..., D_in) -> (..., D_out) per-irrep-channel L2 norms.

    Output dtype follows the input dtype (bf16 in -> bf16 out, halving HBM
    traffic on this memory-bound kernel).  `precision` controls the MXU path:
    "bf16" (default, fastest, ~1e-3 rel err), "hilo" (~f32 accuracy, two bf16
    matmuls), or "float32".
    """
    assert precision in ("bf16", "hilo", "float32")
    irreps = tuple(tuple(mi) for mi in irreps)
    d_in, d_out = irreps_dims(irreps)
    assert features.shape[-1] == d_in, (features.shape, d_in)
    lead = features.shape[:-1]
    x = features.reshape(-1, d_in)
    n = x.shape[0]
    if n == 0:
        return jnp.zeros((*lead, d_out), features.dtype)
    if use_grouped is None:
        # Lane-dense grouped layout needs G*d_in and G*d_out to be lane-aligned.
        use_grouped = (n >= _GROUP
                       and (_GROUP * d_in) % 128 == 0
                       and (_GROUP * d_out) % 128 == 0)

    outs = []
    start = 0
    if use_grouped and n >= _GROUP:
        # Lane-dense bulk: pack _GROUP consecutive logical rows along lanes.
        # The reshape of the contiguous row-major (start, d_in) slab is free.
        n_groups = n // _GROUP
        start = n_groups * _GROUP
        xg = x[:start].reshape(n_groups, _GROUP * d_in)        # (ng, 1664)
        wg = jnp.asarray(_grouped_segment_matrix_np(irreps, _GROUP),
                         dtype=jnp.bfloat16)                   # exact {0,1}
        og = _norm_call(xg, wg, _GROUPED_BLOCK_GROUPS, precision)   # (ng, 640)
        outs.append(og.reshape(start, d_out))
    if start < n:
        # Tail of < _GROUP rows, or the grouped-layout opt-out path.
        w = jnp.asarray(_segment_matrix_np(irreps), dtype=jnp.bfloat16)
        outs.append(_norm_call(x[start:], w, _SIMPLE_BLOCK_ROWS, precision))

    out = outs[0] if len(outs) == 1 else jnp.concatenate(outs, axis=0)
    return out.reshape(*lead, d_out)


# ---------------------------------------------------------------------------
# Pure-JAX reference (mirrors e3nn Norm semantics) for the correctness check.
# ---------------------------------------------------------------------------
def norm_reference(features, irreps=IRREPS_IN):
    irreps = tuple(tuple(mi) for mi in irreps)
    d_in, _ = irreps_dims(irreps)
    lead = features.shape[:-1]
    x = features.reshape(-1, d_in).astype(jnp.float32)
    outs = []
    k = 0
    for mul, l in irreps:
        dim = 2 * l + 1
        blk = x[:, k:k + mul * dim].reshape(-1, mul, dim)
        outs.append(jnp.sqrt(jnp.sum(blk * blk, axis=-1)))
        k += mul * dim
    return jnp.concatenate(outs, axis=-1).reshape(*lead, -1)


if __name__ == "__main__":
    d_in, d_out = irreps_dims(IRREPS_IN)          # 26, 10
    key = jax.random.PRNGKey(0)
    k1, k2, k3 = jax.random.split(key, 3)

    # Small deterministic inputs covering the interesting code paths:
    #   feats_a: 596 rows  -> grouped bulk (9 groups, ragged grid block) +
    #            20-row simple tail (ragged grid block) + concat
    #   feats_b: 8 rows    -> tiny batch, simple path only
    #   feats_c: 128 rows  -> exactly 2 groups, copy-free grouped-only path
    feats_a = jax.random.normal(k1, (4, 149, d_in), dtype=jnp.float32)
    feats_b = jax.random.normal(k2, (2, 4, d_in), dtype=jnp.float32)
    feats_c = jax.random.normal(k3, (2, 64, d_in), dtype=jnp.float32)

    # Per-precision tolerances: "bf16" rounds x^2 to bf16 (~1e-3 rel err);
    # "hilo" and "float32" are ~f32-accurate.
    tols = {"bf16": (5e-3, 5e-3), "hilo": (3e-5, 3e-5), "float32": (1e-5, 1e-5)}

    def check(feats, **kwargs):
        ref = np.asarray(norm_reference(feats))
        out = jax.block_until_ready(norm_forward(feats, **kwargs))
        assert out.shape == feats.shape[:-1] + (d_out,), out.shape
        rtol, atol = tols[kwargs.get("precision", "bf16")]
        np.testing.assert_allclose(np.asarray(out), ref, rtol=rtol, atol=atol)

    # All precisions on the path-rich input.
    for prec in ("bf16", "hilo", "float32"):
        check(feats_a, precision=prec)
    # Default (bf16) on the other shapes.
    check(feats_b)
    check(feats_c)
    # Explicit simple-layout opt-out path, f32-exact.
    check(feats_a, use_grouped=False, precision="float32")

    print("KERNEL_OK")
</pallas_src>

<mosaic_0001>
module attributes {stable_mosaic.version = 11 : i64} {
  func.func @_norm_kernel(%arg0: i32, %arg1: memref<8x1664xf32, #tpu.memory_space<vmem>>, %arg2: memref<1664x640xbf16, #tpu.memory_space<vmem>>, %arg3: memref<8x640xf32, #tpu.memory_space<vmem>>) attributes {dimension_semantics = [#tpu.dimension_semantics<parallel>], iteration_bounds = array<i64: 2>, scalar_prefetch = 0 : i64, scratch_operands = 0 : i64, tpu.core_type = #tpu.core_type<tc>, window_params = [{transform_indices = @transform_0, window_bounds = array<i64: 8, 1664>}, {pipeline_mode = #tpu.pipeline_mode<synchronous>, transform_indices = @transform_1, window_bounds = array<i64: 1664, 640>}, {transform_indices = @transform_2, window_bounds = array<i64: 8, 640>}]} {
    %c0 = arith.constant 0 : index
    %c0_0 = arith.constant 0 : index
    %0 = vector.load %arg1[%c0, %c0_0] : memref<8x1664xf32, #tpu.memory_space<vmem>>, vector<8x1664xf32>
    %1 = arith.mulf %0, %0 : vector<8x1664xf32>
    %c0_1 = arith.constant 0 : index
    %c0_2 = arith.constant 0 : index
    %2 = vector.load %arg2[%c0_1, %c0_2] : memref<1664x640xbf16, #tpu.memory_space<vmem>>, vector<1664x640xbf16>
    %3 = arith.truncf %1 : vector<8x1664xf32> to vector<8x1664xbf16>
    %cst = arith.constant dense<0.000000e+00> : vector<8x640xf32>
    %4 = tpu.matmul %3, %2, %cst {dimension_numbers = #tpu.dot_dimension_numbers<[1], [0], [0], [1], [0, 0, 1, 1], [], []>} : vector<8x1664xbf16>, vector<1664x640xbf16>, vector<8x640xf32> -> vector<8x640xf32>
    %5 = math.sqrt %4 : vector<8x640xf32>
    %c0_3 = arith.constant 0 : index
    %c0_4 = arith.constant 0 : index
    %6 = vector.load %arg3[%c0_3, %c0_4] : memref<8x640xf32, #tpu.memory_space<vmem>>, vector<8x640xf32>
    tpu.vector_store %arg3[%c0_3, %c0_4], %5 {strides = array<i32>} : memref<8x640xf32, #tpu.memory_space<vmem>>, vector<8x640xf32>,
    return
  }
  func.func @transform_0(%arg0: i32) -> (i32, i32) {
    %c0_i32 = arith.constant 0 : i32
    %c0_i32_0 = arith.constant 0 : i32
    return %arg0, %c0_i32 : i32, i32
  }
  func.func @transform_1(%arg0: i32) -> (i32, i32) {
    %c0_i32 = arith.constant 0 : i32
    %c0_i32_0 = arith.constant 0 : i32
    %c0_i32_1 = arith.constant 0 : i32
    return %c0_i32, %c0_i32_0 : i32, i32
  }
  func.func @transform_2(%arg0: i32) -> (i32, i32) {
    %c0_i32 = arith.constant 0 : i32
    %c0_i32_0 = arith.constant 0 : i32
    return %arg0, %c0_i32 : i32, i32
  }
}

</mosaic_0001>

<bundles_post_ra>
// kernel: tpu_custom_call.1
= control target key start
LH: loop header
LB: loop body
LE: loop exit
PB: predicated region body
PF: predicated region fallthrough
CT: control target
= control target key end

     0   :  { %7 = vsyncpa [#allocation3], 0  ;;  %s6462_s0 = inlined_call_operand.hbm [shape: f32[9,1664], index: 0, kind: input, shape index: {}]   ;;  %s6463_s1 = inlined_call_operand.hbm [shape: bf16[1664,640], index: 1, kind: input, shape index: {}]   ;;  %s6464_s2 = inlined_call_operand.hbm [shape: f32[9,640], index: 2, kind: output, shape index: {}]  }
   0x1   :  { %9 = vsyncpa [#allocation3 + $0x1], 0 }
   0x2   :  { %10 = vsyncpa [#allocation6], 0 }
   0x3   :  { %11 = vsyncpa [#allocation4], 0 }
   0x4   :  { %13 = vsyncpa [#allocation4 + $0x1], 0  ;;  %s6175_s9 = smov 0   ;;  %s6177_s10 = smov 0  }
   0x5   :  { %s6179_s11 = smov 0   ;;  %s6181_s12 = smov 0  }
   0x6 LB: > { %s6196_s13 = sadd.s32 4294967295, %s6150_s12   ;;  %s4532_s14 = sadd.s32 4294967294, %s6150_s12   ;;  %s6150_s12 = sphi %s6181_s12, %s6486_s12   ;;  %s6146_s11 = sphi %s6179_s11, %s6485_s11   ;;  %s6142_s10 = sphi %s6177_s10, %s6484_s10   ;;  %s6138_s9 = sphi %s6175_s9, %s6483_s9  }
   0x7   : > { %p39_p0 = scmp.ne.s32.totalorder %s6142_s10, %s6138_s9  ;;  %p6465_p1 = scmp.eq.s32.totalorder %s6196_s13, 0 }
   0x8   : > { %p90_p3 = scmp.eq.s32.totalorder %s4532_s14, 1  ;;  %p4533_p5 = scmp.ge.s32.totalorder %s6150_s12, 1 }
   0x9   : > { %p6205_p4 = por %p6465_p1, %p39_p0  ;;  %p97_p7 = scmp.lt.s32.totalorder %s6150_s12, 3 }
   0xa   : > { %p6210_p6 = por %p90_p3, %p39_p0  ;;  %s6152_s18 = smov [#allocation5]  }
   0xb   : > { %s6469_s15 = scalar_select %p6205_p4, 1, 0 }
   0xc   : > { %s6470_s16 = scalar_select %p6210_p6, 1, 0 }
   0xd   : > { %p6215_p8 = pnand %p4533_p5, %p97_p7  ;;  %s109_s19 = sshll.u32 %s6152_s18, 4  ;;  %s110_s19 = int_to_ptr.vmem [resolvable:$true] %s109_s19 }
   0xe   : > { %s6229_s21 = sadd.s32 1, %s6150_s12   ;;  %s26_s22 = sadd.s32 1, %s6146_s11 }
   0xf   : > { %s6471_s17 = scalar_select %p6215_p8, 1, 0 }
  0x10   : > { %p5236_p9 = pneg %p6215_p8  ;;  %s23_s23 = ssub.s32 %s6150_s12, %s6229_s21 }
  0x11   : > { %s6039_s24 = scalar_lea.vmem %s110_s19, 66560  ;;  %p6047_p5 = scmp.lt.s32.totalorder %s110_s19, %s110_s19 }
  0x12   : > { %p6224_p11 = pnand %p5236_p9, %p6465_p1  ;;  %p6040_p13 = scmp.ne.s32.totalorder %s110_s19, %s6039_s24 }
  0x13   : > { %p6048_p7 = scmp.lt.s32.totalorder %s6039_s24, %s6039_s24 }
  0x14   : > { %p6030_p12 = pneg %p6224_p11 }
  0x15   : > { %p6049_p10 = por %p6048_p7, %p6047_p5 }
  0x16   : > { %p6042_p0 = pnand %p6040_p13, %p6030_p12 }
  0x18   : > { %p6043_p3 = pneg %p6042_p0 }
  0x1a   : > { %p6050_p2 = pnand %p6049_p10, %p6043_p3 }
  0x1c   : > { %6053 = shalt.err (!%p6050_p2)
}
  0x1d   : > { %s6153_s25 = smov 320   ;;  %s6154_s26 = smov 20  }
  0x1e   : > { %5239 = dma.hbm_to_vmem [thread:$0]  (!%p6224_p11), %s6463_s1, 66560, %s110_s19, [#allocation6], %s6153_s25, %s6153_s25, %s6154_s26  }
  0x1f   : > { %p24_p9 = scmp.eq.s32.totalorder %s23_s23, 0  ;;  %p33_p12 = scmp.ne.s32.totalorder %s6146_s11, %s6142_s10 }
  0x20   : > { %p34_p10 = scmp.eq.s32.totalorder %s6150_s12, 0  ;;  %p5249_p2 = scmp.lt.s32.totalorder %s6150_s12, 2 }
  0x21   : > { %s6246_s29 = scalar_select %p24_p9, %s6146_s11, %s26_s22  }
  0x22   : > { %p35_p13 = por %p34_p10, %p33_p12  ;;  %p6473_p0 = scmp.eq.s32.totalorder %s6196_s13, 1 }
  0x23   : > { %s123_s3 = sand.u32 1, %s6146_s11   ;;  %s5224_s4 = smul.u32 1664, %s6150_s12 }
  0x24   : > { %p6250_p3 = por %p6473_p0, %p33_p12  ;;  %s5223_s5 = smul.u32 104, %s123_s3 }
  0x25   : > { %p6256_p5 = pnand %p5249_p2, %p35_p13  ;;  %s6263_s14 = scalar_lea.hbm %s6462_s0, %s5224_s4 }
  0x26   : > { %s6474_s30 = scalar_select %p6250_p3, 1, 0 }
  0x27   : > { %s127_s18 = scalar_lea.vmem [#allocation2], %s5223_s5  ;;  %s124_s20 = scalar_lea.sflag [#allocation3], %s123_s3 }
  0x28   : > { %s135_s19 = sshll.u32 %s127_s18, 4  ;;  %s6054_s22 = scalar_lea.hbm %s6263_s14, 1664  ;;  %s136_s19 = int_to_ptr.vmem [resolvable:$true] %s135_s19 }
  0x29   : > { %p6055_p11 = scmp.ne.s32.totalorder %s6263_s14, %s6054_s22  ;;  %p6056_p7 = pneg %p6256_p5 }
  0x2a   : > { %s6059_s25 = scalar_lea.hbm %s6462_s0, 3328  ;;  %p6060_p10 = scmp.lt.s32.totalorder %s6263_s14, %s6462_s0 }
  0x2b   : > { %p6057_p9 = pnand %p6056_p7, %p6055_p11  ;;  %p6061_p2 = scmp.lt.s32.totalorder %s6059_s25, %s6054_s22 }
  0x2d   : > { %p6058_p12 = pneg %p6057_p9  ;;  %p6062_p13 = por %p6061_p2, %p6060_p10 }
  0x2f   : > { %p6063_p0 = pnand %p6062_p13, %p6058_p12 }
  0x31   : > { %6066 = shalt.err (!%p6063_p0)
}
  0x32   : > { %s6067_s28 = scalar_lea.vmem %s136_s19, 1664  ;;  %s6155_s3 = smov [#allocation2]  }
  0x33   : > { %p6068_p1 = scmp.ne.s32.totalorder %s136_s19, %s6067_s28  ;;  %s6072_s4 = sshll.u32 %s6155_s3, 4  ;;  %s6073_s4 = int_to_ptr.vmem [resolvable:$false] %s6072_s4 }
  0x34   : > { %s6074_s5 = scalar_lea.vmem %s6073_s4, 3328  ;;  %p6075_p11 = scmp.lt.s32.totalorder %s136_s19, %s6073_s4 }
  0x35   : > { %p6070_p6 = pnand %p6068_p1, %p6056_p7  ;;  %p6076_p9 = scmp.lt.s32.totalorder %s6074_s5, %s6067_s28 }
  0x37   : > { %p6071_p3 = pneg %p6070_p6  ;;  %p6077_p4 = por %p6076_p9, %p6075_p11 }
  0x39   : > { %p6078_p8 = pnand %p6077_p4, %p6071_p3 }
  0x3b   : > { %6081 = shalt.err (!%p6078_p8)
}
  0x3c   : > { %5243 = dma.hbm_to_vmem [thread:$0]  (!%p6256_p5), %s6263_s14, 1664, %s136_s19, %s124_s20  }
  0x3d   : > { %p6476_p12 = scmp.ne.s32.totalorder %s6471_s17, 0 }
  0x3e   : > { %s6282_s7 = sand.u32 (!%p6476_p12), 1, %s6142_s10   ;;  %p6477_p1 = scmp.ne.s32.totalorder (!%p6476_p12), %s6469_s15, 0 }
  0x3f   : > { %144 = sbr.rel (%p6476_p12) target bundleno = 843 (0x34b), region = 28  ;;  %s147_s18 = scalar_lea.sflag (!%p6476_p12), [#allocation3], %s6282_s7 }
  0x40   : > { %s5225_s8 = smul.u32 (!%p6476_p12), 104, %s6282_s7 }
  0x42   : > { %s6286_s22 = scalar_lea.vmem (!%p6476_p12), [#allocation2], %s5225_s8 }
  0x44   : > { %6125 = dma.done.wait (%p6477_p1), %s147_s18, 1664  }
  0x45   : > { %6127 = vsyncadd (%p6477_p1), %s147_s18, 4294965632  ;;  %p6478_p4 = scmp.eq.s32.totalorder %s6196_s13, 0 }
  0x47   : > { %6129 = dma.done.wait (%p6478_p4), [#allocation6], 66560   ;;  %p6479_p6 = pmov %p6478_p4 }
  0x48   : > { %v5290_v0 = vld [vmem:[#allocation5 + $0x11c] ss:$20 sps:$4 sm:$0xff]   ;;  %v5294_v2 = vld [vmem:[#allocation5 + $0x118] ss:$20 sps:$4 sm:$0xff]   ;;  %v5296_v4 = vld [vmem:[#allocation5 + $0xf4] ss:$20 sps:$4 sm:$0xff]  }
  0x49   : > { %6131 = vsyncadd (%p6479_p6), [#allocation6], 4294900736  ;;  %v5292_v1 = vld [vmem:[#allocation5 + $0x39c] ss:$20 sps:$4 sm:$0xff]   ;;  %3543 = vmatprep.subr.bf16.mxu0 %v5290_v0  ;;  %v5295_v3 = vld [vmem:[#allocation5 + $0x398] ss:$20 sps:$4 sm:$0xff]  }
  0x4a   : > { %3584 = vmatprep.subr.bf16.mxu1 %v5292_v1  ;;  %3544 = vmatpush1.bf16.msra.mxu0 %v5294_v2  ;;  %v5298_v5 = vld [vmem:[#allocation5 + $0x374] ss:$20 sps:$4 sm:$0xff]   ;;  %v5300_v6 = vld [vmem:[#allocation5 + $0xf0] ss:$20 sps:$4 sm:$0xff]   ;;  %v5302_v8 = vld [vmem:[#allocation5 + $0xcc] ss:$20 sps:$4 sm:$0xff]  }
  0x4b   : > { %3585 = vmatpush1.bf16.msra.mxu1 %v5295_v3  ;;  %3545 = vmatprep.subr.bf16.mxu0 %v5296_v4  ;;  %v5301_v7 = vld [vmem:[#allocation5 + $0x370] ss:$20 sps:$4 sm:$0xff]   ;;  %v5304_v9 = vld [vmem:[#allocation5 + $0x34c] ss:$20 sps:$4 sm:$0xff]   ;;  %v5306_v10 = vld [vmem:[#allocation5 + $0xc8] ss:$20 sps:$4 sm:$0xff]  }
  0x4c   : > { %3586 = vmatprep.subr.bf16.mxu1 %v5298_v5  ;;  %v5307_v11 = vld [vmem:[#allocation5 + $0x348] ss:$20 sps:$4 sm:$0xff]   ;;  %v5308_v12 = vld [vmem:[#allocation5 + $0xa4] ss:$20 sps:$4 sm:$0xff]   ;;  %v5312_v14 = vld [vmem:[#allocation5 + $0xa0] ss:$20 sps:$4 sm:$0xff]  }
  0x4d   : > { %v5310_v13 = vld [vmem:[#allocation5 + $0x324] ss:$20 sps:$4 sm:$0xff]   ;;  %v5313_v15 = vld [vmem:[#allocation5 + $0x320] ss:$20 sps:$4 sm:$0xff]   ;;  %v5314_v16 = vld [vmem:[#allocation5 + $0x7c] ss:$20 sps:$4 sm:$0xff]  }
  0x4e   : > { %3546 = vmatpush1.bf16.msra.mxu0 %v5300_v6  ;;  %v5316_v17 = vld [vmem:[#allocation5 + $0x2fc] ss:$20 sps:$4 sm:$0xff]   ;;  %v5318_v18 = vld [vmem:[#allocation5 + $0x78] ss:$20 sps:$4 sm:$0xff]   ;;  %v5320_v20 = vld [vmem:[#allocation5 + $0x54] ss:$20 sps:$4 sm:$0xff]  }
  0x4f   : > { %3587 = vmatpush1.bf16.msra.mxu1 %v5301_v7  ;;  %3547 = vmatprep.subr.bf16.mxu0 %v5302_v8  ;;  %v5319_v19 = vld [vmem:[#allocation5 + $0x2f8] ss:$20 sps:$4 sm:$0xff]   ;;  %v5322_v21 = vld [vmem:[#allocation5 + $0x2d4] ss:$20 sps:$4 sm:$0xff]   ;;  %v5324_v22 = vld [vmem:[#allocation5 + $0x50] ss:$20 sps:$4 sm:$0xff]  }
  0x50   : > { %3588 = vmatprep.subr.bf16.mxu1 %v5304_v9  ;;  %v5325_v23 = vld [vmem:[#allocation5 + $0x2d0] ss:$20 sps:$4 sm:$0xff]   ;;  %v5326_v24 = vld [vmem:[#allocation5 + $0x2c] ss:$20 sps:$4 sm:$0xff]   ;;  %v5330_v26 = vld [vmem:[#allocation5 + $0x28] ss:$20 sps:$4 sm:$0xff]  }
  0x51   : > { %v5328_v25 = vld [vmem:[#allocation5 + $0x2ac] ss:$20 sps:$4 sm:$0xff]   ;;  %v5331_v27 = vld [vmem:[#allocation5 + $0x2a8] ss:$20 sps:$4 sm:$0xff]   ;;  %v5332_v28 = vld [vmem:[#allocation5 + $0x4] ss:$20 sps:$4 sm:$0xff]  }
  0x52   : > { %3548 = vmatpush1.bf16.msra.mxu0 %v5306_v10  ;;  %v5334_v29 = vld [vmem:[#allocation5 + $0x284] ss:$20 sps:$4 sm:$0xff]   ;;  %v5336_v30 = vld [vmem:[#allocation5] ss:$20 sps:$4 sm:$0xff]   ;;  %v5338_v32 = vld [vmem:[#allocation5 + $0x25c] ss:$20 sps:$4 sm:$0xff]  }
  0x53   : > { %3589 = vmatpush1.bf16.msra.mxu1 %v5307_v11  ;;  %3549 = vmatprep.subr.bf16.mxu0 %v5308_v12  ;;  %v5337_v31 = vld [vmem:[#allocation5 + $0x280] ss:$20 sps:$4 sm:$0xff]   ;;  %v5340_v33 = vld [vmem:[#allocation5 + $0x4dc] ss:$20 sps:$4 sm:$0xff]   ;;  %v5342_v34 = vld [vmem:[#allocation5 + $0x258] ss:$20 sps:$4 sm:$0xff]  }
  0x54   : > { %3590 = vmatprep.subr.bf16.mxu1 %v5310_v13  ;;  %v5343_v35 = vld [vmem:[#allocation5 + $0x4d8] ss:$20 sps:$4 sm:$0xff]   ;;  %v5344_v36 = vld [vmem:[#allocation5 + $0x234] ss:$20 sps:$4 sm:$0xff]   ;;  %v5348_v38 = vld [vmem:[#allocation5 + $0x230] ss:$20 sps:$4 sm:$0xff]  }
  0x55   : > { %v5346_v37 = vld [vmem:[#allocation5 + $0x4b4] ss:$20 sps:$4 sm:$0xff]   ;;  %v5349_v39 = vld [vmem:[#allocation5 + $0x4b0] ss:$20 sps:$4 sm:$0xff]   ;;  %v5350_v40 = vld [vmem:[#allocation5 + $0x20c] ss:$20 sps:$4 sm:$0xff]  }
  0x56   : > { %3550 = vmatpush1.bf16.msra.mxu0 %v5312_v14  ;;  %v5352_v41 = vld [vmem:[#allocation5 + $0x48c] ss:$20 sps:$4 sm:$0xff]   ;;  %v5354_v42 = vld [vmem:[#allocation5 + $0x208] ss:$20 sps:$4 sm:$0xff]   ;;  %v5356_v44 = vld [vmem:[#allocation5 + $0x1e4] ss:$20 sps:$4 sm:$0xff]  }
  0x57   : > { %3591 = vmatpush1.bf16.msra.mxu1 %v5313_v15  ;;  %3551 = vmatprep.subr.bf16.mxu0 %v5314_v16  ;;  %v5355_v43 = vld [vmem:[#allocation5 + $0x488] ss:$20 sps:$4 sm:$0xff]   ;;  %v5358_v45 = vld [vmem:[#allocation5 + $0x464] ss:$20 sps:$4 sm:$0xff]   ;;  %v5360_v47 = vld [vmem:[#allocation5 + $0x1e0] ss:$20 sps:$4 sm:$0xff]  }
  0x58   : > { %3592 = vmatprep.subr.bf16.mxu1 %v5316_v17  ;;  %v177_v46 = vld [vmem:[%s6286_s22 + $0x8] sm:$0xff]  ;;  %v179_v50 = vld [vmem:[%s6286_s22 + $0x18] sm:$0xff]  ;;  %v176_v3 = vld [vmem:[%s6286_s22] sm:$0xff]  ;;  %s5226_s15 = smul.u32 40, %s6282_s7  ;;  %vm6158_vm4 = vmmov 0   ;;  %s4438_s24 = scalar_lea.sflag [#allocation4], %s6282_s7 }
  0x59   : > { %v5361_v48 = vld [vmem:[#allocation5 + $0x460] ss:$20 sps:$4 sm:$0xff]   ;;  %v190_v49 = vmul.f32 %v177_v46, %v177_v46  ;;  %v5362_v51 = vld [vmem:[#allocation5 + $0x1bc] ss:$20 sps:$4 sm:$0xff]   ;;  %v192_v52 = vmul.f32 %v179_v50, %v179_v50  ;;  %v5366_v56 = vld [vmem:[#allocation5 + $0x1b8] ss:$20 sps:$4 sm:$0xff]   ;;  %v189_v8 = vmul.f32 %v176_v3, %v176_v3 }
  0x5a   : > { %3552 = vmatpush1.bf16.msra.mxu0 %v5318_v18  ;;  %v5364_v53 = vld [vmem:[#allocation5 + $0x43c] ss:$20 sps:$4 sm:$0xff]   ;;  %v5367_v57 = vld [vmem:[#allocation5 + $0x438] ss:$20 sps:$4 sm:$0xff]   ;;  %v5368_v58 = vld [vmem:[#allocation5 + $0x194] ss:$20 sps:$4 sm:$0xff]  }
  0x5b   : > { %3593 = vmatpush1.bf16.msra.mxu1 %v5319_v19  ;;  %3553 = vmatprep.subr.bf16.mxu0 %v5320_v20  ;;  %v6298_v54 = vpack.c.bf16 %v190_v49, %v190_v49  ;;  %v6300_v55 = vpack.c.bf16 %v192_v52, %v192_v52  ;;  %v5370_v59 = vld [vmem:[#allocation5 + $0x414] ss:$20 sps:$4 sm:$0xff]   ;;  %v5372_v60 = vld [vmem:[#allocation5 + $0x190] ss:$20 sps:$4 sm:$0xff]   ;;  %v5374_v62 = vld [vmem:[#allocation5 + $0x16c] ss:$20 sps:$4 sm:$0xff]   ;;  %v6306_v12 = vpack.c.bf16 %v189_v8, %v189_v8 }
  0x5c   : > { %3594 = vmatprep.subr.bf16.mxu1 %v5322_v21  ;;  %v5373_v61 = vld [vmem:[#allocation5 + $0x410] ss:$20 sps:$4 sm:$0xff]   ;;  %v5376_v63 = vld [vmem:[#allocation5 + $0x3ec] ss:$20 sps:$4 sm:$0xff]   ;;  %v5378_v0 = vld [vmem:[#allocation5 + $0x168] ss:$20 sps:$4 sm:$0xff]  }
  0x5d   : > { %3575 = vmatprep.mubr.bf16.mxu0 %v6298_v54  ;;  %3616 = vmatprep.mubr.bf16.mxu1 %v6300_v55  ;;  %v5379_v1 = vld [vmem:[#allocation5 + $0x3e8] ss:$20 sps:$4 sm:$0xff]   ;;  %v5380_v2 = vld [vmem:[#allocation5 + $0x144] ss:$20 sps:$4 sm:$0xff]   ;;  %v5384_v6 = vld [vmem:[#allocation5 + $0x140] ss:$20 sps:$4 sm:$0xff]  }
  0x5e   : > { %3554 = vmatpush1.bf16.msra.mxu0 %v5324_v22  ;;  %v178_v4 = vld [vmem:[%s6286_s22 + $0x10] sm:$0xff]  ;;  %v5388_v10 = vld [vmem:[#allocation5 + $0x61c] ss:$20 sps:$4 sm:$0xff]   ;;  %s6390_s17 = scalar_lea.vmem [#allocation7], %s5226_s15  ;;  %s5227_s6 = smul.u32 640, %s6196_s13 }
  0x5f   : > { %3595 = vmatpush1.bf16.msra.mxu1 %v5325_v23  ;;  %3555 = vmatprep.subr.bf16.mxu0 %v5326_v24  ;;  %v5382_v5 = vld [vmem:[#allocation5 + $0x3c4] ss:$20 sps:$4 sm:$0xff]   ;;  %v5385_v7 = vld [vmem:[#allocation5 + $0x3c0] ss:$20 sps:$4 sm:$0xff]   ;;  %v191_v9 = vmul.f32 %v178_v4, %v178_v4  ;;  %v5391_v11 = vld [vmem:[#allocation5 + $0x89c] ss:$20 sps:$4 sm:$0xff]  }
  0x60   : > { %3596 = vmatprep.subr.bf16.mxu1 %v5328_v25  ;;  %v5386_v14 = vld [vmem:[#allocation5 + $0x618] ss:$20 sps:$4 sm:$0xff]   ;;  %v5394_v16 = vld [vmem:[#allocation5 + $0x5f4] ss:$20 sps:$4 sm:$0xff]   ;;  %v5392_v18 = vld [vmem:[#allocation5 + $0x5f0] ss:$20 sps:$4 sm:$0xff]   ;;  %s6424_s23 = scalar_lea.hbm %s6464_s2, %s5227_s6 }
  0x61   : > { %v6308_v13 = vpack.c.bf16 %v191_v9, %v191_v9  ;;  %v5389_v15 = vld [vmem:[#allocation5 + $0x898] ss:$20 sps:$4 sm:$0xff]   ;;  %v5397_v17 = vld [vmem:[#allocation5 + $0x874] ss:$20 sps:$4 sm:$0xff]   ;;  %v5395_v19 = vld [vmem:[#allocation5 + $0x870] ss:$20 sps:$4 sm:$0xff]  }
  0x62   : > { %3556 = vmatpush1.bf16.msra.mxu0 %v5330_v26  ;;  %v5400_v20 = vld [vmem:[#allocation5 + $0x5cc] ss:$20 sps:$4 sm:$0xff]   ;;  %v5398_v22 = vld [vmem:[#allocation5 + $0x5c8] ss:$20 sps:$4 sm:$0xff]   ;;  %v5406_v24 = vld [vmem:[#allocation5 + $0x5a4] ss:$20 sps:$4 sm:$0xff]  }
  0x63   : > { %3597 = vmatpush1.bf16.msra.mxu1 %v5331_v27  ;;  %3557 = vmatprep.subr.bf16.mxu0 %v5332_v28  ;;  %v5403_v21 = vld [vmem:[#allocation5 + $0x84c] ss:$20 sps:$4 sm:$0xff]   ;;  %v5401_v23 = vld [vmem:[#allocation5 + $0x848] ss:$20 sps:$4 sm:$0xff]   ;;  %v5409_v25 = vld [vmem:[#allocation5 + $0x824] ss:$20 sps:$4 sm:$0xff]  }
  0x64   : > { %3598 = vmatprep.subr.bf16.mxu1 %v5334_v29  ;;  %v5404_v26 = vld [vmem:[#allocation5 + $0x5a0] ss:$20 sps:$4 sm:$0xff]   ;;  %v5412_v28 = vld [vmem:[#allocation5 + $0x57c] ss:$20 sps:$4 sm:$0xff]   ;;  %v5434_v52 = vld [vmem:[#allocation5 + $0x758] ss:$20 sps:$4 sm:$0xff]  }
  0x65   : > { %v5407_v27 = vld [vmem:[#allocation5 + $0x820] ss:$20 sps:$4 sm:$0xff]   ;;  %v5415_v29 = vld [vmem:[#allocation5 + $0x7fc] ss:$20 sps:$4 sm:$0xff]   ;;  %s4452_s14 = sshll.u32 %s6390_s17, 4  ;;  %p6480_p3 = scmp.ne.s32.totalorder %s6474_s30, 0  ;;  %s4453_s14 = int_to_ptr.vmem [resolvable:$true] %s4452_s14 }
  0x66   : > { %3558 = vmatpush1.bf16.msra.mxu0 %v5336_v30  ;;  %v5410_v30 = vld [vmem:[#allocation5 + $0x578] ss:$20 sps:$4 sm:$0xff]   ;;  %v5431_v49 = vld [vmem:[#allocation5 + $0x780] ss:$20 sps:$4 sm:$0xff]   ;;  %v5436_v50 = vld [vmem:[#allocation5 + $0x75c] ss:$20 sps:$4 sm:$0xff]  }
  0x67   : > { %3599 = vmatpush1.bf16.msra.mxu1 %v5337_v31  ;;  %3559 = vmatprep.subr.bf16.mxu0 %v5338_v32  ;;  %v5413_v31 = vld [vmem:[#allocation5 + $0x7f8] ss:$20 sps:$4 sm:$0xff]   ;;  %v5418_v32 = vld [vmem:[#allocation5 + $0x554] ss:$20 sps:$4 sm:$0xff]   ;;  %v5460_v4 = vld [vmem:[#allocation5 + $0x6bc] ss:$20 sps:$4 sm:$0xff]  }
  0x68   : > { %3600 = vmatprep.subr.bf16.mxu1 %v5340_v33  ;;  %v5421_v33 = vld [vmem:[#allocation5 + $0x7d4] ss:$20 sps:$4 sm:$0xff]   ;;  %s6082_s25 = scalar_lea.vmem %s4453_s14, 640  ;;  %s6159_s13 = smov [#allocation7]  }
  0x69   : > { %v5455_v3 = vld [vmem:[#allocation5 + $0x960] ss:$20 sps:$4 sm:$0xff]   ;;  %p6083_p8 = scmp.ne.s32.totalorder %s4453_s14, %s6082_s25  ;;  %s6086_s26 = sshll.u32 %s6159_s13, 4  ;;  %s6087_s26 = int_to_ptr.vmem [resolvable:$false] %s6086_s26 }
  0x6a   : > { %3560 = vmatpush2.bf16.msra.mxu0 %v5342_v34  ;;  %v5416_v34 = vld [vmem:[#allocation5 + $0x550] ss:$20 sps:$4 sm:$0xff]   ;;  %v5466_v8 = vld [vmem:[#allocation5 + $0x694] ss:$20 sps:$4 sm:$0xff]   ;;  %s6088_s27 = scalar_lea.vmem %s6087_s26, 1280  ;;  %p6089_p10 = scmp.lt.s32.totalorder %s4453_s14, %s6087_s26 }
  0x6b   : > { %3601 = vmatpush2.bf16.msra.mxu1 %v5343_v35  ;;  %3561 = vmatprep.subr.bf16.mxu0 %v5344_v36  ;;  %v5419_v35 = vld [vmem:[#allocation5 + $0x7d0] ss:$20 sps:$4 sm:$0xff]   ;;  %v5424_v36 = vld [vmem:[#allocation5 + $0x52c] ss:$20 sps:$4 sm:$0xff]   ;;  %v5469_v9 = vld [vmem:[#allocation5 + $0x914] ss:$20 sps:$4 sm:$0xff]   ;;  %p6084_p5 = pnand %p6083_p8, %p6480_p3  ;;  %p6090_p2 = scmp.lt.s32.totalorder %s6088_s27, %s6082_s25 }
  0x6c   : > { %3602 = vmatprep.subr.bf16.mxu1 %v5346_v37  ;;  %v5427_v37 = vld [vmem:[#allocation5 + $0x7ac] ss:$20 sps:$4 sm:$0xff]  }
  0x6d   : > { %p6085_p7 = pneg %p6084_p5  ;;  %p6091_p13 = por %p6090_p2, %p6089_p10 }
  0x6e   : > { %3562 = vmatpush2.bf16.msra.mxu0 %v5348_v38  ;;  %v181_v38 = vld [vmem:[%s6286_s22 + $0x28] sm:$0xff] }
  0x6f   : > { %3603 = vmatpush2.bf16.msra.mxu1 %v5349_v39  ;;  %3563 = vmatprep.subr.bf16.mxu0 %v5350_v40  ;;  %v5422_v39 = vld [vmem:[#allocation5 + $0x528] ss:$20 sps:$4 sm:$0xff]   ;;  %v194_v40 = vmul.f32 %v181_v38, %v181_v38  ;;  %v5491_v38 = vld [vmem:[#allocation5 + $0xd70] ss:$20 sps:$4 sm:$0xff]   ;;  %p6092_p0 = pnand %p6091_p13, %p6085_p7 }
  0x70   : > { %3604 = vmatprep.subr.bf16.mxu1 %v5352_v41  ;;  %v183_v41 = vld [vmem:[%s6286_s22 + $0x38] sm:$0xff] }
  0x71   : > { %v6314_v46 = vpack.c.bf16 %v194_v40, %v194_v40 }
  0x72   : > { %3564 = vmatpush2.bf16.msra.mxu0 %v5354_v42  ;;  %v5425_v42 = vld [vmem:[#allocation5 + $0x7a8] ss:$20 sps:$4 sm:$0xff]  }
  0x73   : > { %3605 = vmatpush2.bf16.msra.mxu1 %v5355_v43  ;;  %3565 = vmatprep.subr.bf16.mxu0 %v5356_v44  ;;  %v5430_v43 = vld [vmem:[#allocation5 + $0x504] ss:$20 sps:$4 sm:$0xff]   ;;  %v196_v44 = vmul.f32 %v183_v41, %v183_v41  ;;  %v5499_v41 = vld [vmem:[#allocation5 + $0xd4c] ss:$20 sps:$4 sm:$0xff]  }
  0x74   : > { %3606 = vmatprep.subr.bf16.mxu1 %v5358_v45  ;;  %v5433_v45 = vld [vmem:[#allocation5 + $0x784] ss:$20 sps:$4 sm:$0xff]  }
  0x76   : > { %3566 = vmatpush2.bf16.msra.mxu0 %v5360_v47  ;;  %v6316_v47 = vpack.c.bf16 %v196_v44, %v196_v44  ;;  %v5494_v44 = vld [vmem:[#allocation5 + $0xac8] ss:$20 sps:$4 sm:$0xff]  }
  0x77   : > { %3607 = vmatpush2.bf16.msra.mxu1 %v5361_v48  ;;  %3567 = vmatprep.subr.bf16.mxu0 %v5362_v51  ;;  %v5428_v48 = vld [vmem:[#allocation5 + $0x500] ss:$20 sps:$4 sm:$0xff]   ;;  %v5439_v51 = vld [vmem:[#allocation5 + $0x9dc] ss:$20 sps:$4 sm:$0xff]  }
  0x78   : > { %3608 = vmatprep.subr.bf16.mxu1 %v5364_v53  ;;  %v5437_v53 = vld [vmem:[#allocation5 + $0x9d8] ss:$20 sps:$4 sm:$0xff]  }
  0x7a   : > { %3568 = vmatpush2.bf16.msra.mxu0 %v5366_v56  ;;  %v5442_v56 = vld [vmem:[#allocation5 + $0x734] ss:$20 sps:$4 sm:$0xff]  }
  0x7b   : > { %3609 = vmatpush2.bf16.msra.mxu1 %v5367_v57  ;;  %3569 = vmatprep.subr.bf16.mxu0 %v5368_v58  ;;  %v5445_v57 = vld [vmem:[#allocation5 + $0x9b4] ss:$20 sps:$4 sm:$0xff]   ;;  %v5440_v58 = vld [vmem:[#allocation5 + $0x730] ss:$20 sps:$4 sm:$0xff]  }
  0x7c   : > { %3610 = vmatprep.subr.bf16.mxu1 %v5370_v59  ;;  %v5443_v59 = vld [vmem:[#allocation5 + $0x9b0] ss:$20 sps:$4 sm:$0xff]  }
  0x7e   : > { %3570 = vmatpush2.bf16.msra.mxu0 %v5372_v60  ;;  %v5448_v60 = vld [vmem:[#allocation5 + $0x70c] ss:$20 sps:$4 sm:$0xff]  }
  0x7f   : > { %3611 = vmatpush2.bf16.msra.mxu1 %v5373_v61  ;;  %3571 = vmatprep.subr.bf16.mxu0 %v5374_v62  ;;  %v5451_v61 = vld [vmem:[#allocation5 + $0x98c] ss:$20 sps:$4 sm:$0xff]   ;;  %v5446_v62 = vld [vmem:[#allocation5 + $0x708] ss:$20 sps:$4 sm:$0xff]  }
  0x80   : > { %3612 = vmatprep.subr.bf16.mxu1 %v5376_v63  ;;  %v5449_v63 = vld [vmem:[#allocation5 + $0x988] ss:$20 sps:$4 sm:$0xff]  }
  0x82   : > { %3572 = vmatpush2.bf16.msra.mxu0 %v5378_v0  ;;  %v5454_v0 = vld [vmem:[#allocation5 + $0x6e4] ss:$20 sps:$4 sm:$0xff]  }
  0x83   : > { %3613 = vmatpush2.bf16.msra.mxu1 %v5379_v1  ;;  %3573 = vmatprep.subr.bf16.mxu0 %v5380_v2  ;;  %v5457_v1 = vld [vmem:[#allocation5 + $0x964] ss:$20 sps:$4 sm:$0xff]   ;;  %v5452_v2 = vld [vmem:[#allocation5 + $0x6e0] ss:$20 sps:$4 sm:$0xff]  }
  0x84   : > { %3614 = vmatprep.subr.bf16.mxu1 %v5382_v5  ;;  %v5463_v5 = vld [vmem:[#allocation5 + $0x93c] ss:$20 sps:$4 sm:$0xff]  }
  0x86   : > { %3574 = vmatpush2.bf16.msra.mxu0 %v5384_v6  ;;  %v5458_v6 = vld [vmem:[#allocation5 + $0x6b8] ss:$20 sps:$4 sm:$0xff]  }
  0x87   : > { %3615 = vmatpush2.bf16.msra.mxu1 %v5385_v7  ;;  %3625 = vmatprep.subr.bf16.mxu0 %v5388_v10  ;;  %v5461_v7 = vld [vmem:[#allocation5 + $0x938] ss:$20 sps:$4 sm:$0xff]   ;;  %v5464_v10 = vld [vmem:[#allocation5 + $0x690] ss:$20 sps:$4 sm:$0xff]  }
  0x88   : > { %3666 = vmatprep.subr.bf16.mxu1 %v5391_v11  ;;  %v5467_v11 = vld [vmem:[#allocation5 + $0x910] ss:$20 sps:$4 sm:$0xff]  }
  0x89   : > { %3576 = vmatmul.mubr.bf16.vlgmr.msra.gmra.mxu0 %v6306_v12 }
  0x8a   : > { %3617 = vmatmul.mubr.bf16.vlgmr.msra.gmra.mxu1 %v6308_v13  ;;  %3626 = vmatpush1.bf16.msra.mxu0 %v5386_v14  ;;  %v5472_v14 = vld [vmem:[#allocation5 + $0x66c] ss:$20 sps:$4 sm:$0xff]  }
  0x8b   : > { %3667 = vmatpush1.bf16.msra.mxu1 %v5389_v15  ;;  %3627 = vmatprep.subr.bf16.mxu0 %v5394_v16  ;;  %v5475_v15 = vld [vmem:[#allocation5 + $0x8ec] ss:$20 sps:$4 sm:$0xff]   ;;  %v5470_v16 = vld [vmem:[#allocation5 + $0x668] ss:$20 sps:$4 sm:$0xff]  }
  0x8c   : > { %3668 = vmatprep.subr.bf16.mxu1 %v5397_v17  ;;  %3657 = vmatprep.mubr.bf16.mxu0 %v6314_v46  ;;  %v5473_v17 = vld [vmem:[#allocation5 + $0x8e8] ss:$20 sps:$4 sm:$0xff]  }
  0x8d   : > { %3698 = vmatprep.mubr.bf16.mxu1 %v6316_v47 }
  0x8e   : > { %3628 = vmatpush1.bf16.msra.mxu0 %v5392_v18  ;;  %v5478_v18 = vld [vmem:[#allocation5 + $0x644] ss:$20 sps:$4 sm:$0xff]  }
  0x8f   : > { %3669 = vmatpush1.bf16.msra.mxu1 %v5395_v19  ;;  %3629 = vmatprep.subr.bf16.mxu0 %v5400_v20  ;;  %v180_v19 = vld [vmem:[%s6286_s22 + $0x20] sm:$0xff]  ;;  %v182_v20 = vld [vmem:[%s6286_s22 + $0x30] sm:$0xff] }
  0x90   : > { %3670 = vmatprep.subr.bf16.mxu1 %v5403_v21  ;;  %v5481_v21 = vld [vmem:[#allocation5 + $0x8c4] ss:$20 sps:$4 sm:$0xff]  }
  0x92   : > { %3630 = vmatpush1.bf16.msra.mxu0 %v5398_v22  ;;  %v5476_v22 = vld [vmem:[#allocation5 + $0x640] ss:$20 sps:$4 sm:$0xff]  }
  0x93   : > { %3671 = vmatpush1.bf16.msra.mxu1 %v5401_v23  ;;  %3631 = vmatprep.subr.bf16.mxu0 %v5406_v24  ;;  %v5479_v23 = vld [vmem:[#allocation5 + $0x8c0] ss:$20 sps:$4 sm:$0xff]   ;;  %v193_v24 = vmul.f32 %v180_v19, %v180_v19  ;;  %v5545_v19 = vld [vmem:[#allocation5 + $0xe88] ss:$20 sps:$4 sm:$0xff]  }
  0x94   : > { %3672 = vmatprep.subr.bf16.mxu1 %v5409_v25  ;;  %v195_v25 = vmul.f32 %v182_v20, %v182_v20  ;;  %v5550_v20 = vld [vmem:[#allocation5 + $0xbe4] ss:$20 sps:$4 sm:$0xff]  }
  0x96   : > { %3632 = vmatpush1.bf16.msra.mxu0 %v5404_v26  ;;  %v5484_v26 = vld [vmem:[#allocation5 + $0xb1c] ss:$20 sps:$4 sm:$0xff]  }
  0x97   : > { %3673 = vmatpush1.bf16.msra.mxu1 %v5407_v27  ;;  %3633 = vmatprep.subr.bf16.mxu0 %v5412_v28  ;;  %v5487_v27 = vld [vmem:[#allocation5 + $0xd9c] ss:$20 sps:$4 sm:$0xff]   ;;  %v6322_v28 = vpack.c.bf16 %v193_v24, %v193_v24 }
  0x98   : > { %3674 = vmatprep.subr.bf16.mxu1 %v5415_v29  ;;  %v5482_v29 = vld [vmem:[#allocation5 + $0xb18] ss:$20 sps:$4 sm:$0xff]   ;;  %v5556_v24 = vld [vmem:[#allocation5 + $0xbbc] ss:$20 sps:$4 sm:$0xff]  }
  0x9a   : > { %3634 = vmatpush1.bf16.msra.mxu0 %v5410_v30  ;;  %v5485_v30 = vld [vmem:[#allocation5 + $0xd98] ss:$20 sps:$4 sm:$0xff]  }
  0x9b   : > { %3675 = vmatpush1.bf16.msra.mxu1 %v5413_v31  ;;  %3635 = vmatprep.subr.bf16.mxu0 %v5418_v32  ;;  %v6324_v31 = vpack.c.bf16 %v195_v25, %v195_v25  ;;  %v5490_v32 = vld [vmem:[#allocation5 + $0xaf4] ss:$20 sps:$4 sm:$0xff]   ;;  %v5559_v25 = vld [vmem:[#allocation5 + $0xe3c] ss:$20 sps:$4 sm:$0xff]  }
  0x9c   : > { %3676 = vmatprep.subr.bf16.mxu1 %v5421_v33  ;;  %v5493_v33 = vld [vmem:[#allocation5 + $0xd74] ss:$20 sps:$4 sm:$0xff]  }
  0x9e   : > { %3636 = vmatpush1.bf16.msra.mxu0 %v5416_v34  ;;  %v185_v34 = vld [vmem:[%s6286_s22 + $0x48] sm:$0xff] }
  0x9f   : > { %3677 = vmatpush1.bf16.msra.mxu1 %v5419_v35  ;;  %3637 = vmatprep.subr.bf16.mxu0 %v5424_v36  ;;  %v5488_v35 = vld [vmem:[#allocation5 + $0xaf0] ss:$20 sps:$4 sm:$0xff]   ;;  %v198_v36 = vmul.f32 %v185_v34, %v185_v34  ;;  %v5568_v34 = vld [vmem:[#allocation5 + $0xb6c] ss:$20 sps:$4 sm:$0xff]  }
  0xa0   : > { %3678 = vmatprep.subr.bf16.mxu1 %v5427_v37  ;;  %v187_v37 = vld [vmem:[%s6286_s22 + $0x58] sm:$0xff] }
  0xa1   : > { %v200_v40 = vmul.f32 %v187_v37, %v187_v37  ;;  %v5569_v37 = vld [vmem:[#allocation5 + $0xde8] ss:$20 sps:$4 sm:$0xff]  }
  0xa2   : > { %3638 = vmatpush1.bf16.msra.mxu0 %v5422_v39  ;;  %v5496_v39 = vld [vmem:[#allocation5 + $0xacc] ss:$20 sps:$4 sm:$0xff]  }
  0xa3   : > { %3679 = vmatpush1.bf16.msra.mxu1 %v5425_v42  ;;  %3639 = vmatprep.subr.bf16.mxu0 %v5430_v43  ;;  %v6330_v42 = vpack.c.bf16 %v198_v36, %v198_v36  ;;  %v6332_v43 = vpack.c.bf16 %v200_v40, %v200_v40  ;;  %v5566_v36 = vld [vmem:[#allocation5 + $0xb68] ss:$20 sps:$4 sm:$0xff]   ;;  %v5574_v40 = vld [vmem:[#allocation5 + $0xb44] ss:$20 sps:$4 sm:$0xff]  }
  0xa4   : > { %3680 = vmatprep.subr.bf16.mxu1 %v5433_v45  ;;  %v5497_v45 = vld [vmem:[#allocation5 + $0xd48] ss:$20 sps:$4 sm:$0xff]  }
  0xa6   : > { %3640 = vmatpush1.bf16.msra.mxu0 %v5428_v48  ;;  %v5502_v48 = vld [vmem:[#allocation5 + $0xaa4] ss:$20 sps:$4 sm:$0xff]  }
  0xa7   : > { %3681 = vmatpush1.bf16.msra.mxu1 %v5431_v49  ;;  %3641 = vmatprep.subr.bf16.mxu0 %v5436_v50  ;;  %v5505_v49 = vld [vmem:[#allocation5 + $0xd24] ss:$20 sps:$4 sm:$0xff]   ;;  %v5500_v50 = vld [vmem:[#allocation5 + $0xaa0] ss:$20 sps:$4 sm:$0xff]  }
  0xa8   : > { %3682 = vmatprep.subr.bf16.mxu1 %v5439_v51  ;;  %v5503_v51 = vld [vmem:[#allocation5 + $0xd20] ss:$20 sps:$4 sm:$0xff]  }
  0xaa   : > { %3642 = vmatpush2.bf16.msra.mxu0 %v5434_v52  ;;  %v5508_v52 = vld [vmem:[#allocation5 + $0xa7c] ss:$20 sps:$4 sm:$0xff]  }
  0xab   : > { %3683 = vmatpush2.bf16.msra.mxu1 %v5437_v53  ;;  %3643 = vmatprep.subr.bf16.mxu0 %v5442_v56  ;;  %v5511_v53 = vld [vmem:[#allocation5 + $0xcfc] ss:$20 sps:$4 sm:$0xff]   ;;  %v5506_v56 = vld [vmem:[#allocation5 + $0xa78] ss:$20 sps:$4 sm:$0xff]  }
  0xac   : > { %3684 = vmatprep.subr.bf16.mxu1 %v5445_v57  ;;  %v5509_v57 = vld [vmem:[#allocation5 + $0xcf8] ss:$20 sps:$4 sm:$0xff]  }
  0xae   : > { %3644 = vmatpush2.bf16.msra.mxu0 %v5440_v58  ;;  %v5514_v58 = vld [vmem:[#allocation5 + $0xa54] ss:$20 sps:$4 sm:$0xff]  }
  0xaf   : > { %3685 = vmatpush2.bf16.msra.mxu1 %v5443_v59  ;;  %3645 = vmatprep.subr.bf16.mxu0 %v5448_v60  ;;  %v5517_v59 = vld [vmem:[#allocation5 + $0xcd4] ss:$20 sps:$4 sm:$0xff]   ;;  %v5512_v60 = vld [vmem:[#allocation5 + $0xa50] ss:$20 sps:$4 sm:$0xff]  }
  0xb0   : > { %3686 = vmatprep.subr.bf16.mxu1 %v5451_v61  ;;  %v5515_v61 = vld [vmem:[#allocation5 + $0xcd0] ss:$20 sps:$4 sm:$0xff]  }
  0xb2   : > { %3646 = vmatpush2.bf16.msra.mxu0 %v5446_v62  ;;  %v5520_v62 = vld [vmem:[#allocation5 + $0xa2c] ss:$20 sps:$4 sm:$0xff]  }
  0xb3   : > { %3687 = vmatpush2.bf16.msra.mxu1 %v5449_v63  ;;  %3647 = vmatprep.subr.bf16.mxu0 %v5454_v0  ;;  %v5523_v63 = vld [vmem:[#allocation5 + $0xcac] ss:$20 sps:$4 sm:$0xff]   ;;  %v5518_v0 = vld [vmem:[#allocation5 + $0xa28] ss:$20 sps:$4 sm:$0xff]  }
  0xb4   : > { %3688 = vmatprep.subr.bf16.mxu1 %v5457_v1  ;;  %v5521_v1 = vld [vmem:[#allocation5 + $0xca8] ss:$20 sps:$4 sm:$0xff]  }
  0xb6   : > { %3648 = vmatpush2.bf16.msra.mxu0 %v5452_v2  ;;  %v5526_v2 = vld [vmem:[#allocation5 + $0xa04] ss:$20 sps:$4 sm:$0xff]  }
  0xb7   : > { %3689 = vmatpush2.bf16.msra.mxu1 %v5455_v3  ;;  %3649 = vmatprep.subr.bf16.mxu0 %v5460_v4  ;;  %v5529_v3 = vld [vmem:[#allocation5 + $0xc84] ss:$20 sps:$4 sm:$0xff]   ;;  %v5524_v4 = vld [vmem:[#allocation5 + $0xa00] ss:$20 sps:$4 sm:$0xff]  }
  0xb8   : > { %3690 = vmatprep.subr.bf16.mxu1 %v5463_v5  ;;  %v5527_v5 = vld [vmem:[#allocation5 + $0xc80] ss:$20 sps:$4 sm:$0xff]  }
  0xba   : > { %3650 = vmatpush2.bf16.msra.mxu0 %v5458_v6  ;;  %v5532_v6 = vld [vmem:[#allocation5 + $0xc5c] ss:$20 sps:$4 sm:$0xff]  }
  0xbb   : > { %3691 = vmatpush2.bf16.msra.mxu1 %v5461_v7  ;;  %3651 = vmatprep.subr.bf16.mxu0 %v5466_v8  ;;  %v5535_v7 = vld [vmem:[#allocation5 + $0xedc] ss:$20 sps:$4 sm:$0xff]   ;;  %v5530_v8 = vld [vmem:[#allocation5 + $0xc58] ss:$20 sps:$4 sm:$0xff]  }
  0xbc   : > { %3692 = vmatprep.subr.bf16.mxu1 %v5469_v9  ;;  %v5533_v9 = vld [vmem:[#allocation5 + $0xed8] ss:$20 sps:$4 sm:$0xff]  }
  0xbe   : > { %3652 = vmatpush2.bf16.msra.mxu0 %v5464_v10  ;;  %v5538_v10 = vld [vmem:[#allocation5 + $0xc34] ss:$20 sps:$4 sm:$0xff]  }
  0xbf   : > { %3693 = vmatpush2.bf16.msra.mxu1 %v5467_v11  ;;  %3653 = vmatprep.subr.bf16.mxu0 %v5472_v14  ;;  %v5541_v11 = vld [vmem:[#allocation5 + $0xeb4] ss:$20 sps:$4 sm:$0xff]   ;;  %v5536_v14 = vld [vmem:[#allocation5 + $0xc30] ss:$20 sps:$4 sm:$0xff]  }
  0xc0   : > { %3694 = vmatprep.subr.bf16.mxu1 %v5475_v15  ;;  %v5539_v15 = vld [vmem:[#allocation5 + $0xeb0] ss:$20 sps:$4 sm:$0xff]  }
  0xc2   : > { %3654 = vmatpush2.bf16.msra.mxu0 %v5470_v16  ;;  %v5544_v16 = vld [vmem:[#allocation5 + $0xc0c] ss:$20 sps:$4 sm:$0xff]  }
  0xc3   : > { %3695 = vmatpush2.bf16.msra.mxu1 %v5473_v17  ;;  %3655 = vmatprep.subr.bf16.mxu0 %v5478_v18  ;;  %v5547_v17 = vld [vmem:[#allocation5 + $0xe8c] ss:$20 sps:$4 sm:$0xff]   ;;  %v5542_v18 = vld [vmem:[#allocation5 + $0xc08] ss:$20 sps:$4 sm:$0xff]  }
  0xc4   : > { %3696 = vmatprep.subr.bf16.mxu1 %v5481_v21  ;;  %v5553_v21 = vld [vmem:[#allocation5 + $0xe64] ss:$20 sps:$4 sm:$0xff]  }
  0xc6   : > { %3656 = vmatpush2.bf16.msra.mxu0 %v5476_v22  ;;  %v5548_v22 = vld [vmem:[#allocation5 + $0xbe0] ss:$20 sps:$4 sm:$0xff]  }
  0xc7   : > { %3697 = vmatpush2.bf16.msra.mxu1 %v5479_v23  ;;  %3707 = vmatprep.subr.bf16.mxu0 %v5484_v26  ;;  %v5551_v23 = vld [vmem:[#allocation5 + $0xe60] ss:$20 sps:$4 sm:$0xff]   ;;  %v5554_v26 = vld [vmem:[#allocation5 + $0xbb8] ss:$20 sps:$4 sm:$0xff]  }
  0xc8   : > { %3748 = vmatprep.subr.bf16.mxu1 %v5487_v27  ;;  %v5557_v27 = vld [vmem:[#allocation5 + $0xe38] ss:$20 sps:$4 sm:$0xff]  }
  0xc9   : > { %3658 = vmatmul.mubr.bf16.vlgmr.msra.gmra.mxu0 %v6322_v28 }
  0xca   : > { %3699 = vmatmul.mubr.bf16.vlgmr.msra.gmra.mxu1 %v6324_v31  ;;  %3708 = vmatpush1.bf16.msra.mxu0 %v5482_v29  ;;  %v5562_v29 = vld [vmem:[#allocation5 + $0xb94] ss:$20 sps:$4 sm:$0xff]  }
  0xcb   : > { %3749 = vmatpush1.bf16.msra.mxu1 %v5485_v30  ;;  %3709 = vmatprep.subr.bf16.mxu0 %v5490_v32  ;;  %v5565_v30 = vld [vmem:[#allocation5 + $0xe14] ss:$20 sps:$4 sm:$0xff]   ;;  %v5560_v32 = vld [vmem:[#allocation5 + $0xb90] ss:$20 sps:$4 sm:$0xff]  }
  0xcc   : > { %3750 = vmatprep.subr.bf16.mxu1 %v5493_v33  ;;  %3739 = vmatprep.mubr.bf16.mxu0 %v6330_v42  ;;  %v5563_v33 = vld [vmem:[#allocation5 + $0xe10] ss:$20 sps:$4 sm:$0xff]  }
  0xcd   : > { %3780 = vmatprep.mubr.bf16.mxu1 %v6332_v43 }
  0xce   : > { %3710 = vmatpush1.bf16.msra.mxu0 %v5488_v35  ;;  %v5571_v35 = vld [vmem:[#allocation5 + $0xdec] ss:$20 sps:$4 sm:$0xff]  }
  0xcf   : > { %3751 = vmatpush1.bf16.msra.mxu1 %v5491_v38  ;;  %3711 = vmatprep.subr.bf16.mxu0 %v5496_v39  ;;  %v184_v38 = vld [vmem:[%s6286_s22 + $0x40] sm:$0xff]  ;;  %v186_v39 = vld [vmem:[%s6286_s22 + $0x50] sm:$0xff] }
  0xd0   : > { %3752 = vmatprep.subr.bf16.mxu1 %v5499_v41  ;;  %v5577_v41 = vld [vmem:[#allocation5 + $0xdc4] ss:$20 sps:$4 sm:$0xff]  }
  0xd2   : > { %3712 = vmatpush1.bf16.msra.mxu0 %v5494_v44  ;;  %v5572_v44 = vld [vmem:[#allocation5 + $0xb40] ss:$20 sps:$4 sm:$0xff]  }
  0xd3   : > { %3753 = vmatpush1.bf16.msra.mxu1 %v5497_v45  ;;  %3713 = vmatprep.subr.bf16.mxu0 %v5502_v48  ;;  %v197_v45 = vmul.f32 %v184_v38, %v184_v38  ;;  %v199_v48 = vmul.f32 %v186_v39, %v186_v39  ;;  %v5640_v38 = vld [vmem:[#allocation5 + $0x214] ss:$20 sps:$4 sm:$0xff]  }
  0xd4   : > { %3754 = vmatprep.subr.bf16.mxu1 %v5505_v49  ;;  %v5575_v49 = vld [vmem:[#allocation5 + $0xdc0] ss:$20 sps:$4 sm:$0xff]  }
  0xd5   : > { %v5643_v39 = vld [vmem:[#allocation5 + $0x354] ss:$20 sps:$4 sm:$0xff]  }
  0xd6   : > { %3714 = vmatpush1.bf16.msra.mxu0 %v5500_v50  ;;  %v5580_v50 = vld [vmem:[#allocation5 + $0x101c] ss:$20 sps:$4 sm:$0xff]  }
  0xd7   : > { %3755 = vmatpush1.bf16.msra.mxu1 %v5503_v51  ;;  %3715 = vmatprep.subr.bf16.mxu0 %v5508_v52  ;;  %v5583_v51 = vld [vmem:[#allocation5 + $0x124] ss:$20 sps:$4 sm:$0xff]   ;;  %v6338_v52 = vpack.c.bf16 %v197_v45, %v197_v45  ;;  %v5649_v45 = vld [vmem:[#allocation5 + $0x32c] ss:$20 sps:$4 sm:$0xff]  }
  0xd8   : > { %3756 = vmatprep.subr.bf16.mxu1 %v5511_v53  ;;  %v5578_v53 = vld [vmem:[#allocation5 + $0x1018] ss:$20 sps:$4 sm:$0xff]  }
  0xda   : > { %3716 = vmatpush1.bf16.msra.mxu0 %v5506_v56  ;;  %v6340_v56 = vpack.c.bf16 %v199_v48, %v199_v48  ;;  %v5644_v48 = vld [vmem:[#allocation5 + $0x1e8] ss:$20 sps:$4 sm:$0xff]  }
  0xdb   : > { %3757 = vmatpush1.bf16.msra.mxu1 %v5509_v57  ;;  %3717 = vmatprep.subr.bf16.mxu0 %v5514_v58  ;;  %v5581_v57 = vld [vmem:[#allocation5 + $0x120] ss:$20 sps:$4 sm:$0xff]  }
  0xdc   : > { %3758 = vmatprep.subr.bf16.mxu1 %v5517_v59  ;;  %v5586_v58 = vld [vmem:[#allocation5 + $0xff4] ss:$20 sps:$4 sm:$0xff]   ;;  %v5589_v59 = vld [vmem:[#allocation5 + $0xfc] ss:$20 sps:$4 sm:$0xff]  }
  0xde   : > { %3718 = vmatpush1.bf16.msra.mxu0 %v5512_v60  ;;  %v5584_v60 = vld [vmem:[#allocation5 + $0xff0] ss:$20 sps:$4 sm:$0xff]  }
  0xdf   : > { %3759 = vmatpush1.bf16.msra.mxu1 %v5515_v61  ;;  %3719 = vmatprep.subr.bf16.mxu0 %v5520_v62  ;;  %v5587_v61 = vld [vmem:[#allocation5 + $0xf8] ss:$20 sps:$4 sm:$0xff]  }
  0xe0   : > { %3760 = vmatprep.subr.bf16.mxu1 %v5523_v63  ;;  %v5592_v62 = vld [vmem:[#allocation5 + $0xfcc] ss:$20 sps:$4 sm:$0xff]   ;;  %v5595_v63 = vld [vmem:[#allocation5 + $0xd4] ss:$20 sps:$4 sm:$0xff]  }
  0xe2   : > { %3720 = vmatpush1.bf16.msra.mxu0 %v5518_v0  ;;  %v6156_v0 = vmov 0  }
  0xe3   : > { %3761 = vmatpush1.bf16.msra.mxu1 %v5521_v1  ;;  %3721 = vmatprep.subr.bf16.mxu0 %v5526_v2  ;;  %v5590_v1 = vld [vmem:[#allocation5 + $0xfc8] ss:$20 sps:$4 sm:$0xff]   ;;  %v5593_v2 = vld [vmem:[#allocation5 + $0xd0] ss:$20 sps:$4 sm:$0xff]  }
  0xe4   : > { %3762 = vmatprep.subr.bf16.mxu1 %v5529_v3  ;;  %v5598_v3 = vld [vmem:[#allocation5 + $0xfa4] ss:$20 sps:$4 sm:$0xff]  }
  0xe6   : > { %3722 = vmatpush1.bf16.msra.mxu0 %v5524_v4  ;;  %v5601_v4 = vld [vmem:[#allocation5 + $0xac] ss:$20 sps:$4 sm:$0xff]  }
  0xe7   : > { %3763 = vmatpush1.bf16.msra.mxu1 %v5527_v5  ;;  %3723 = vmatprep.subr.bf16.mxu0 %v5532_v6  ;;  %v5596_v5 = vld [vmem:[#allocation5 + $0xfa0] ss:$20 sps:$4 sm:$0xff]   ;;  %v5599_v6 = vld [vmem:[#allocation5 + $0xa8] ss:$20 sps:$4 sm:$0xff]  }
  0xe8   : > { %3764 = vmatprep.subr.bf16.mxu1 %v5535_v7  ;;  %v5604_v7 = vld [vmem:[#allocation5 + $0xf7c] ss:$20 sps:$4 sm:$0xff]  }
  0xea   : > { %3724 = vmatpush2.bf16.msra.mxu0 %v5530_v8  ;;  %v5607_v8 = vld [vmem:[#allocation5 + $0x84] ss:$20 sps:$4 sm:$0xff]  }
  0xeb   : > { %3765 = vmatpush2.bf16.msra.mxu1 %v5533_v9  ;;  %3725 = vmatprep.subr.bf16.mxu0 %v5538_v10  ;;  %v5602_v9 = vld [vmem:[#allocation5 + $0xf78] ss:$20 sps:$4 sm:$0xff]   ;;  %v5605_v10 = vld [vmem:[#allocation5 + $0x80] ss:$20 sps:$4 sm:$0xff]  }
  0xec   : > { %3766 = vmatprep.subr.bf16.mxu1 %v5541_v11  ;;  %v5610_v11 = vld [vmem:[#allocation5 + $0xf54] ss:$20 sps:$4 sm:$0xff]  }
  0xee   : > { %3726 = vmatpush2.bf16.msra.mxu0 %v5536_v14  ;;  %v5613_v14 = vld [vmem:[#allocation5 + $0x5c] ss:$20 sps:$4 sm:$0xff]  }
  0xef   : > { %3767 = vmatpush2.bf16.msra.mxu1 %v5539_v15  ;;  %3727 = vmatprep.subr.bf16.mxu0 %v5544_v16  ;;  %v5608_v15 = vld [vmem:[#allocation5 + $0xf50] ss:$20 sps:$4 sm:$0xff]   ;;  %v5611_v16 = vld [vmem:[#allocation5 + $0x58] ss:$20 sps:$4 sm:$0xff]  }
  0xf0   : > { %3768 = vmatprep.subr.bf16.mxu1 %v5547_v17  ;;  %v5616_v17 = vld [vmem:[#allocation5 + $0xf2c] ss:$20 sps:$4 sm:$0xff]  }
  0xf2   : > { %3728 = vmatpush2.bf16.msra.mxu0 %v5542_v18  ;;  %v5619_v18 = vld [vmem:[#allocation5 + $0x34] ss:$20 sps:$4 sm:$0xff]  }
  0xf3   : > { %3769 = vmatpush2.bf16.msra.mxu1 %v5545_v19  ;;  %3729 = vmatprep.subr.bf16.mxu0 %v5550_v20  ;;  %v5614_v19 = vld [vmem:[#allocation5 + $0xf28] ss:$20 sps:$4 sm:$0xff]   ;;  %v5617_v20 = vld [vmem:[#allocation5 + $0x30] ss:$20 sps:$4 sm:$0xff]  }
  0xf4   : > { %3770 = vmatprep.subr.bf16.mxu1 %v5553_v21  ;;  %v188_v21 = vld [vmem:[%s6286_s22 + $0x60] sm:$0xff] }
  0xf6   : > { %3730 = vmatpush2.bf16.msra.mxu0 %v5548_v22  ;;  %v5622_v22 = vld [vmem:[#allocation5 + $0xf04] ss:$20 sps:$4 sm:$0xff]  }
  0xf7   : > { %3771 = vmatpush2.bf16.msra.mxu1 %v5551_v23  ;;  %3731 = vmatprep.subr.bf16.mxu0 %v5556_v24  ;;  %v5625_v23 = vld [vmem:[#allocation5 + $0xc] ss:$20 sps:$4 sm:$0xff]  }
  0xf8   : > { %3772 = vmatprep.subr.bf16.mxu1 %v5559_v25  ;;  %v5620_v24 = vld [vmem:[#allocation5 + $0xf00] ss:$20 sps:$4 sm:$0xff]   ;;  %v201_v25 = vmul.f32 %v188_v21, %v188_v21 }
  0xfa   : > { %3732 = vmatpush2.bf16.msra.mxu0 %v5554_v26  ;;  %v5623_v26 = vld [vmem:[#allocation5 + $0x8] ss:$20 sps:$4 sm:$0xff]  }
  0xfb   : > { %3773 = vmatpush2.bf16.msra.mxu1 %v5557_v27  ;;  %3733 = vmatprep.subr.bf16.mxu0 %v5562_v29  ;;  %v5628_v27 = vld [vmem:[#allocation5 + $0x264] ss:$20 sps:$4 sm:$0xff]  }
  0xfc   : > { %3774 = vmatprep.subr.bf16.mxu1 %v5565_v30  ;;  %v5631_v29 = vld [vmem:[#allocation5 + $0x3a4] ss:$20 sps:$4 sm:$0xff]   ;;  %v6347_v30 = vpack.c.bf16 %v201_v25, %v201_v25 }
  0xfe   : > { %3734 = vmatpush2.bf16.msra.mxu0 %v5560_v32  ;;  %v5626_v32 = vld [vmem:[#allocation5 + $0x260] ss:$20 sps:$4 sm:$0xff]  }
  0xff   : > { %3775 = vmatpush2.bf16.msra.mxu1 %v5563_v33  ;;  %3735 = vmatprep.subr.bf16.mxu0 %v5568_v34  ;;  %v5629_v33 = vld [vmem:[#allocation5 + $0x3a0] ss:$20 sps:$4 sm:$0xff]   ;;  %v5634_v34 = vld [vmem:[#allocation5 + $0x23c] ss:$20 sps:$4 sm:$0xff]  }
 0x100   : > { %3776 = vmatprep.subr.bf16.mxu1 %v5571_v35  ;;  %v5637_v35 = vld [vmem:[#allocation5 + $0x37c] ss:$20 sps:$4 sm:$0xff]  }
 0x102   : > { %3736 = vmatpush2.bf16.msra.mxu0 %v5566_v36  ;;  %v5632_v36 = vld [vmem:[#allocation5 + $0x238] ss:$20 sps:$4 sm:$0xff]  }
 0x103   : > { %3777 = vmatpush2.bf16.msra.mxu1 %v5569_v37  ;;  %3737 = vmatprep.subr.bf16.mxu0 %v5574_v40  ;;  %v5635_v37 = vld [vmem:[#allocation5 + $0x378] ss:$20 sps:$4 sm:$0xff]   ;;  %v5638_v40 = vld [vmem:[#allocation5 + $0x210] ss:$20 sps:$4 sm:$0xff]  }
 0x104   : > { %3778 = vmatprep.subr.bf16.mxu1 %v5577_v41  ;;  %v5641_v41 = vld [vmem:[#allocation5 + $0x350] ss:$20 sps:$4 sm:$0xff]  }
 0x106   : > { %3738 = vmatpush2.bf16.msra.mxu0 %v5572_v44  ;;  %v5646_v44 = vld [vmem:[#allocation5 + $0x1ec] ss:$20 sps:$4 sm:$0xff]  }
 0x107   : > { %3779 = vmatpush2.bf16.msra.mxu1 %v5575_v49  ;;  %3789 = vmatprep.subr.bf16.mxu0 %v5580_v50  ;;  %v5647_v49 = vld [vmem:[#allocation5 + $0x328] ss:$20 sps:$4 sm:$0xff]   ;;  %v5652_v50 = vld [vmem:[#allocation5 + $0x1c4] ss:$20 sps:$4 sm:$0xff]  }
 0x108   : > { %3830 = vmatprep.subr.bf16.mxu1 %v5583_v51  ;;  %v5655_v51 = vld [vmem:[#allocation5 + $0x304] ss:$20 sps:$4 sm:$0xff]  }
 0x109   : > { %3740 = vmatmul.mubr.bf16.vlgmr.msra.gmra.mxu0 %v6338_v52 }
 0x10a   : > { %3781 = vmatmul.mubr.bf16.vlgmr.msra.gmra.mxu1 %v6340_v56  ;;  %3790 = vmatpush1.bf16.msra.mxu0 %v5578_v53  ;;  %v5650_v53 = vld [vmem:[#allocation5 + $0x1c0] ss:$20 sps:$4 sm:$0xff]  }
 0x10b   : > { %3831 = vmatpush1.bf16.msra.mxu1 %v5581_v57  ;;  %3791 = vmatprep.subr.bf16.mxu0 %v5586_v58  ;;  %v5653_v57 = vld [vmem:[#allocation5 + $0x300] ss:$20 sps:$4 sm:$0xff]   ;;  %v5658_v58 = vld [vmem:[#allocation5 + $0x19c] ss:$20 sps:$4 sm:$0xff]  }
 0x10c   : > { %3832 = vmatprep.subr.bf16.mxu1 %v5589_v59  ;;  %3821 = vmatprep.mubr.bf16.mxu0 %v6156_v0  ;;  %v5661_v59 = vld [vmem:[#allocation5 + $0x2dc] ss:$20 sps:$4 sm:$0xff]  }
 0x10d   : > { %3862 = vmatprep.mubr.bf16.mxu1 %v6298_v54 }
 0x10e   : > { %3792 = vmatpush1.bf16.msra.mxu0 %v5584_v60  ;;  %v5656_v60 = vld [vmem:[#allocation5 + $0x198] ss:$20 sps:$4 sm:$0xff]  }
 0x10f   : > { %3833 = vmatpush1.bf16.msra.mxu1 %v5587_v61  ;;  %3793 = vmatprep.subr.bf16.mxu0 %v5592_v62  ;;  %v5659_v61 = vld [vmem:[#allocation5 + $0x2d8] ss:$20 sps:$4 sm:$0xff]   ;;  %v5664_v62 = vld [vmem:[#allocation5 + $0x174] ss:$20 sps:$4 sm:$0xff]  }
 0x110   : > { %3834 = vmatprep.subr.bf16.mxu1 %v5595_v63  ;;  %v5667_v63 = vld [vmem:[#allocation5 + $0x2b4] ss:$20 sps:$4 sm:$0xff]  }
 0x112   : > { %3794 = vmatpush1.bf16.msra.mxu0 %v5590_v1  ;;  %v5662_v1 = vld [vmem:[#allocation5 + $0x170] ss:$20 sps:$4 sm:$0xff]  }
 0x113   : > { %3835 = vmatpush1.bf16.msra.mxu1 %v5593_v2  ;;  %3795 = vmatprep.subr.bf16.mxu0 %v5598_v3  ;;  %v5665_v2 = vld [vmem:[#allocation5 + $0x2b0] ss:$20 sps:$4 sm:$0xff]   ;;  %v5670_v3 = vld [vmem:[#allocation5 + $0x14c] ss:$20 sps:$4 sm:$0xff]  }
 0x114   : > { %3836 = vmatprep.subr.bf16.mxu1 %v5601_v4  ;;  %v5673_v4 = vld [vmem:[#allocation5 + $0x28c] ss:$20 sps:$4 sm:$0xff]  }
 0x116   : > { %3796 = vmatpush1.bf16.msra.mxu0 %v5596_v5  ;;  %v5668_v5 = vld [vmem:[#allocation5 + $0x148] ss:$20 sps:$4 sm:$0xff]  }
 0x117   : > { %3837 = vmatpush1.bf16.msra.mxu1 %v5599_v6  ;;  %3797 = vmatprep.subr.bf16.mxu0 %v5604_v7  ;;  %v5671_v6 = vld [vmem:[#allocation5 + $0x288] ss:$20 sps:$4 sm:$0xff]   ;;  %v5676_v7 = vld [vmem:[#allocation5 + $0x4e4] ss:$20 sps:$4 sm:$0xff]  }
 0x118   : > { %3838 = vmatprep.subr.bf16.mxu1 %v5607_v8  ;;  %v5679_v8 = vld [vmem:[#allocation5 + $0x624] ss:$20 sps:$4 sm:$0xff]  }
 0x11a   : > { %3798 = vmatpush1.bf16.msra.mxu0 %v5602_v9  ;;  %v5674_v9 = vld [vmem:[#allocation5 + $0x4e0] ss:$20 sps:$4 sm:$0xff]  }
 0x11b   : > { %3839 = vmatpush1.bf16.msra.mxu1 %v5605_v10  ;;  %3799 = vmatprep.subr.bf16.mxu0 %v5610_v11  ;;  %v5677_v10 = vld [vmem:[#allocation5 + $0x620] ss:$20 sps:$4 sm:$0xff]   ;;  %v5682_v11 = vld [vmem:[#allocation5 + $0x4bc] ss:$20 sps:$4 sm:$0xff]  }
 0x11c   : > { %3840 = vmatprep.subr.bf16.mxu1 %v5613_v14  ;;  %v5685_v14 = vld [vmem:[#allocation5 + $0x5fc] ss:$20 sps:$4 sm:$0xff]  }
 0x11e   : > { %3800 = vmatpush1.bf16.msra.mxu0 %v5608_v15 }
 0x11f   : > { %3841 = vmatpush1.bf16.msra.mxu1 %v5611_v16  ;;  %3801 = vmatprep.subr.bf16.mxu0 %v5616_v17  ;;  %v5680_v17 = vld [vmem:[#allocation5 + $0x4b8] ss:$20 sps:$4 sm:$0xff]  }
 0x120   : > { %3842 = vmatprep.subr.bf16.mxu1 %v5619_v18 }
 0x122   : > { %3802 = vmatpush1.bf16.msra.mxu0 %v5614_v19  ;;  %v5683_v19 = vld [vmem:[#allocation5 + $0x5f8] ss:$20 sps:$4 sm:$0xff]  }
 0x123   : > { %3843 = vmatpush1.bf16.msra.mxu1 %v5617_v20  ;;  %3803 = vmatprep.subr.bf16.mxu0 %v5622_v22  ;;  %v5688_v22 = vld [vmem:[#allocation5 + $0x494] ss:$20 sps:$4 sm:$0xff]  }
 0x124   : > { %3844 = vmatprep.subr.bf16.mxu1 %v5625_v23  ;;  %v5691_v23 = vld [vmem:[#allocation5 + $0x5d4] ss:$20 sps:$4 sm:$0xff]  }
 0x126   : > { %3804 = vmatpush1.bf16.msra.mxu0 %v5620_v24 }
 0x127   : > { %3845 = vmatpush1.bf16.msra.mxu1 %v5623_v26  ;;  %3871 = vmatprep.subr.bf16.mxu0 %v5631_v29  ;;  %v5686_v26 = vld [vmem:[#allocation5 + $0x490] ss:$20 sps:$4 sm:$0xff]  }
 0x128   : > { %3846 = vmatprep.subr.bf16.mxu1 %v5628_v27  ;;  %v5689_v29 = vld [vmem:[#allocation5 + $0x5d0] ss:$20 sps:$4 sm:$0xff]  }
 0x129   : > { %3822 = vmatmul.mubr.bf16.vlgmr.msra.gmra.mxu0 %v6347_v30 }
 0x12a   : > { %3872 = vmatpush1.bf16.msra.mxu0 %v5629_v33  ;;  %3903 = vmatprep.mubr.bf16.mxu0 %v6300_v55  ;;  %v5694_v33 = vld [vmem:[#allocation5 + $0x46c] ss:$20 sps:$4 sm:$0xff]  }
 0x12b   : > { %3847 = vmatpush2.bf16.msra.mxu1 %v5626_v32  ;;  %3873 = vmatprep.subr.bf16.mxu0 %v5637_v35 }
 0x12c   : > { %3848 = vmatprep.subr.bf16.mxu1 %v5634_v34  ;;  %v5697_v34 = vld [vmem:[#allocation5 + $0x5ac] ss:$20 sps:$4 sm:$0xff]  }
 0x12e   : > { %3874 = vmatpush1.bf16.msra.mxu0 %v5635_v37  ;;  %v5695_v37 = vld [vmem:[#allocation5 + $0x5a8] ss:$20 sps:$4 sm:$0xff]  }
 0x12f   : > { %3849 = vmatpush2.bf16.msra.mxu1 %v5632_v36  ;;  %3875 = vmatprep.subr.bf16.mxu0 %v5643_v39  ;;  %v5692_v36 = vld [vmem:[#allocation5 + $0x468] ss:$20 sps:$4 sm:$0xff]   ;;  %v5703_v39 = vld [vmem:[#allocation5 + $0x584] ss:$20 sps:$4 sm:$0xff]  }
 0x130   : > { %3850 = vmatprep.subr.bf16.mxu1 %v5640_v38  ;;  %v5700_v38 = vld [vmem:[#allocation5 + $0x444] ss:$20 sps:$4 sm:$0xff]  }
 0x132   : > { %3876 = vmatpush1.bf16.msra.mxu0 %v5641_v41  ;;  %v5701_v41 = vld [vmem:[#allocation5 + $0x580] ss:$20 sps:$4 sm:$0xff]  }
 0x133   : > { %3851 = vmatpush2.bf16.msra.mxu1 %v5638_v40  ;;  %3877 = vmatprep.subr.bf16.mxu0 %v5649_v45  ;;  %v5698_v40 = vld [vmem:[#allocation5 + $0x440] ss:$20 sps:$4 sm:$0xff]   ;;  %v5709_v45 = vld [vmem:[#allocation5 + $0x55c] ss:$20 sps:$4 sm:$0xff]  }
 0x134   : > { %3852 = vmatprep.subr.bf16.mxu1 %v5646_v44  ;;  %v5706_v44 = vld [vmem:[#allocation5 + $0x41c] ss:$20 sps:$4 sm:$0xff]  }
 0x136   : > { %3878 = vmatpush1.bf16.msra.mxu0 %v5647_v49  ;;  %v5707_v49 = vld [vmem:[#allocation5 + $0x558] ss:$20 sps:$4 sm:$0xff]  }
 0x137   : > { %3853 = vmatpush2.bf16.msra.mxu1 %v5644_v48  ;;  %3879 = vmatprep.subr.bf16.mxu0 %v5655_v51  ;;  %v5704_v48 = vld [vmem:[#allocation5 + $0x418] ss:$20 sps:$4 sm:$0xff]   ;;  %v5715_v51 = vld [vmem:[#allocation5 + $0x534] ss:$20 sps:$4 sm:$0xff]  }
 0x138   : > { %3854 = vmatprep.subr.bf16.mxu1 %v5652_v50  ;;  %v5712_v50 = vld [vmem:[#allocation5 + $0x3f4] ss:$20 sps:$4 sm:$0xff]  }
 0x13a   : > { %3880 = vmatpush1.bf16.msra.mxu0 %v5653_v57  ;;  %v5713_v57 = vld [vmem:[#allocation5 + $0x530] ss:$20 sps:$4 sm:$0xff]  }
 0x13b   : > { %3855 = vmatpush2.bf16.msra.mxu1 %v5650_v53  ;;  %3881 = vmatprep.subr.bf16.mxu0 %v5661_v59  ;;  %v5710_v53 = vld [vmem:[#allocation5 + $0x3f0] ss:$20 sps:$4 sm:$0xff]   ;;  %v5721_v59 = vld [vmem:[#allocation5 + $0x50c] ss:$20 sps:$4 sm:$0xff]  }
 0x13c   : > { %3856 = vmatprep.subr.bf16.mxu1 %v5658_v58  ;;  %v5718_v58 = vld [vmem:[#allocation5 + $0x3cc] ss:$20 sps:$4 sm:$0xff]  }
 0x13e   : > { %3882 = vmatpush1.bf16.msra.mxu0 %v5659_v61  ;;  %v5719_v61 = vld [vmem:[#allocation5 + $0x508] ss:$20 sps:$4 sm:$0xff]  }
 0x13f   : > { %3857 = vmatpush2.bf16.msra.mxu1 %v5656_v60  ;;  %3883 = vmatprep.subr.bf16.mxu0 %v5667_v63  ;;  %v5716_v60 = vld [vmem:[#allocation5 + $0x3c8] ss:$20 sps:$4 sm:$0xff]   ;;  %v5727_v63 = vld [vmem:[#allocation5 + $0x8a4] ss:$20 sps:$4 sm:$0xff]  }
 0x140   : > { %3858 = vmatprep.subr.bf16.mxu1 %v5664_v62  ;;  %v5724_v62 = vld [vmem:[#allocation5 + $0x764] ss:$20 sps:$4 sm:$0xff]  }
 0x142   : > { %3884 = vmatpush1.bf16.msra.mxu0 %v5665_v2  ;;  %v5725_v2 = vld [vmem:[#allocation5 + $0x8a0] ss:$20 sps:$4 sm:$0xff]  }
 0x143   : > { %3859 = vmatpush2.bf16.msra.mxu1 %v5662_v1  ;;  %3885 = vmatprep.subr.bf16.mxu0 %v5673_v4  ;;  %v5722_v1 = vld [vmem:[#allocation5 + $0x760] ss:$20 sps:$4 sm:$0xff]   ;;  %v5733_v4 = vld [vmem:[#allocation5 + $0x87c] ss:$20 sps:$4 sm:$0xff]  }
 0x144   : > { %3860 = vmatprep.subr.bf16.mxu1 %v5670_v3  ;;  %v5730_v3 = vld [vmem:[#allocation5 + $0x73c] ss:$20 sps:$4 sm:$0xff]  }
 0x146   : > { %3886 = vmatpush1.bf16.msra.mxu0 %v5671_v6  ;;  %v5731_v6 = vld [vmem:[#allocation5 + $0x878] ss:$20 sps:$4 sm:$0xff]  }
 0x147   : > { %3861 = vmatpush2.bf16.msra.mxu1 %v5668_v5  ;;  %3887 = vmatprep.subr.bf16.mxu0 %v5676_v7  ;;  %v5728_v5 = vld [vmem:[#allocation5 + $0x738] ss:$20 sps:$4 sm:$0xff]   ;;  %v5736_v7 = vld [vmem:[#allocation5 + $0x714] ss:$20 sps:$4 sm:$0xff]  }
 0x148   : > { %3912 = vmatprep.subr.bf16.mxu1 %v5679_v8  ;;  %v5739_v8 = vld [vmem:[#allocation5 + $0x854] ss:$20 sps:$4 sm:$0xff]  }
 0x149   : > { %v3577_v15 = vpop.f32.mrf.mxu0 }
 0x14a   : > { %v3618_v16 = vpop.f32.mrf.mxu1  ;;  %3863 = vmatmul.mubr.bf16.vlgmr.msra.gmra.mxu1 %v6306_v12  ;;  %3888 = vmatpush2.bf16.msra.mxu0 %v5674_v9  ;;  %v5734_v9 = vld [vmem:[#allocation5 + $0x710] ss:$20 sps:$4 sm:$0xff]  }
 0x14b   : > { %v6352_v18 = vadd.f32 %v3618_v16, %v3577_v15  ;;  %3913 = vmatpush1.bf16.msra.mxu1 %v5677_v10  ;;  %v3579_v20 = vpop.f32.mrf.mxu0  ;;  %3889 = vmatprep.subr.bf16.mxu0 %v5682_v11  ;;  %v5737_v10 = vld [vmem:[#allocation5 + $0x850] ss:$20 sps:$4 sm:$0xff]   ;;  %v5742_v11 = vld [vmem:[#allocation5 + $0x6ec] ss:$20 sps:$4 sm:$0xff]   ;;  %v5740_v15 = vld [vmem:[#allocation5 + $0x6e8] ss:$20 sps:$4 sm:$0xff]  }
 0x14c   : > { %v3620_v21 = vpop.f32.mrf.mxu1  ;;  %3914 = vmatprep.subr.bf16.mxu1 %v5685_v14  ;;  %3944 = vmatprep.mubr.bf16.mxu1 %v6314_v46  ;;  %v5745_v14 = vld [vmem:[#allocation5 + $0x82c] ss:$20 sps:$4 sm:$0xff]   ;;  %v5743_v16 = vld [vmem:[#allocation5 + $0x828] ss:$20 sps:$4 sm:$0xff]  }
 0x14d   : > { %v6354_v24 = vadd.f32 %v3620_v21, %v3579_v20  ;;  %v3581_v25 = vpop.f32.mrf.mxu0  ;;  %v5746_v20 = vld [vmem:[#allocation5 + $0x6c0] ss:$20 sps:$4 sm:$0xff]  }
 0x14e   : > { %v3622_v27 = vpop.f32.mrf.mxu1  ;;  %3890 = vmatpush2.bf16.msra.mxu0 %v5680_v17  ;;  %v5748_v17 = vld [vmem:[#allocation5 + $0x6c4] ss:$20 sps:$4 sm:$0xff]   ;;  %v5749_v21 = vld [vmem:[#allocation5 + $0x800] ss:$20 sps:$4 sm:$0xff]  }
 0x14f   : > { %3915 = vmatpush1.bf16.msra.mxu1 %v5683_v19  ;;  %v3582_v32 = vpop.f32.mrf.mxu0  ;;  %3891 = vmatprep.subr.bf16.mxu0 %v5688_v22  ;;  %v5751_v19 = vld [vmem:[#allocation5 + $0x804] ss:$20 sps:$4 sm:$0xff]   ;;  %v5754_v22 = vld [vmem:[#allocation5 + $0x69c] ss:$20 sps:$4 sm:$0xff]   ;;  %v5760_v27 = vld [vmem:[#allocation5 + $0x674] ss:$20 sps:$4 sm:$0xff]  }
 0x150   : > { %3916 = vmatprep.subr.bf16.mxu1 %v5691_v23  ;;  %v3623_v35 = vpop.f32.mrf.mxu1  ;;  %v5757_v23 = vld [vmem:[#allocation5 + $0x7dc] ss:$20 sps:$4 sm:$0xff]   ;;  %v5752_v25 = vld [vmem:[#allocation5 + $0x698] ss:$20 sps:$4 sm:$0xff]  }
 0x151   : > { %v5758_v32 = vld [vmem:[#allocation5 + $0x670] ss:$20 sps:$4 sm:$0xff]   ;;  %v5769_v35 = vld [vmem:[#allocation5 + $0x78c] ss:$20 sps:$4 sm:$0xff]  }
 0x152   : > { %3892 = vmatpush2.bf16.msra.mxu0 %v5686_v26  ;;  %v5755_v26 = vld [vmem:[#allocation5 + $0x7d8] ss:$20 sps:$4 sm:$0xff]  }
 0x153   : > { %3917 = vmatpush1.bf16.msra.mxu1 %v5689_v29  ;;  %3893 = vmatprep.subr.bf16.mxu0 %v5694_v33  ;;  %v5763_v29 = vld [vmem:[#allocation5 + $0x7b4] ss:$20 sps:$4 sm:$0xff]   ;;  %v5761_v33 = vld [vmem:[#allocation5 + $0x7b0] ss:$20 sps:$4 sm:$0xff]  }
 0x154   : > { %3918 = vmatprep.subr.bf16.mxu1 %v5697_v34  ;;  %v5766_v34 = vld [vmem:[#allocation5 + $0x64c] ss:$20 sps:$4 sm:$0xff]  }
 0x156   : > { %3894 = vmatpush2.bf16.msra.mxu0 %v5692_v36  ;;  %v5764_v36 = vld [vmem:[#allocation5 + $0x648] ss:$20 sps:$4 sm:$0xff]  }
 0x157   : > { %3919 = vmatpush1.bf16.msra.mxu1 %v5695_v37  ;;  %3895 = vmatprep.subr.bf16.mxu0 %v5700_v38  ;;  %v5767_v37 = vld [vmem:[#allocation5 + $0x788] ss:$20 sps:$4 sm:$0xff]   ;;  %v5772_v38 = vld [vmem:[#allocation5 + $0x9e4] ss:$20 sps:$4 sm:$0xff]  }
 0x158   : > { %3920 = vmatprep.subr.bf16.mxu1 %v5703_v39  ;;  %v5775_v39 = vld [vmem:[#allocation5 + $0xb24] ss:$20 sps:$4 sm:$0xff]  }
 0x15a   : > { %3896 = vmatpush2.bf16.msra.mxu0 %v5698_v40  ;;  %v5770_v40 = vld [vmem:[#allocation5 + $0x9e0] ss:$20 sps:$4 sm:$0xff]  }
 0x15b   : > { %3921 = vmatpush1.bf16.msra.mxu1 %v5701_v41  ;;  %3897 = vmatprep.subr.bf16.mxu0 %v5706_v44  ;;  %v5773_v41 = vld [vmem:[#allocation5 + $0xb20] ss:$20 sps:$4 sm:$0xff]   ;;  %v5778_v44 = vld [vmem:[#allocation5 + $0x9bc] ss:$20 sps:$4 sm:$0xff]  }
 0x15c   : > { %3922 = vmatprep.subr.bf16.mxu1 %v5709_v45  ;;  %v5781_v45 = vld [vmem:[#allocation5 + $0xafc] ss:$20 sps:$4 sm:$0xff]  }
 0x15e   : > { %3898 = vmatpush2.bf16.msra.mxu0 %v5704_v48 }
 0x15f   : > { %3923 = vmatpush1.bf16.msra.mxu1 %v5707_v49  ;;  %3899 = vmatprep.subr.bf16.mxu0 %v5712_v50 }
 0x160   : > { %3924 = vmatprep.subr.bf16.mxu1 %v5715_v51  ;;  %v5776_v51 = vld [vmem:[#allocation5 + $0x9b8] ss:$20 sps:$4 sm:$0xff]  }
 0x162   : > { %3900 = vmatpush2.bf16.msra.mxu0 %v5710_v53  ;;  %v5779_v53 = vld [vmem:[#allocation5 + $0xaf8] ss:$20 sps:$4 sm:$0xff]  }
 0x163   : > { %3925 = vmatpush1.bf16.msra.mxu1 %v5713_v57  ;;  %3901 = vmatprep.subr.bf16.mxu0 %v5718_v58  ;;  %v5784_v57 = vld [vmem:[#allocation5 + $0x994] ss:$20 sps:$4 sm:$0xff]  }
 0x164   : > { %3926 = vmatprep.subr.bf16.mxu1 %v5721_v59 }
 0x166   : > { %3902 = vmatpush2.bf16.msra.mxu0 %v5716_v60  ;;  %v5787_v60 = vld [vmem:[#allocation5 + $0xad4] ss:$20 sps:$4 sm:$0xff]  }
 0x167   : > { %3927 = vmatpush1.bf16.msra.mxu1 %v5719_v61  ;;  %3953 = vmatprep.subr.bf16.mxu0 %v5727_v63 }
 0x168   : > { %3928 = vmatprep.subr.bf16.mxu1 %v5724_v62 }
 0x169   : > { %3904 = vmatmul.mubr.bf16.vlgmr.msra.gmra.mxu0 %v6308_v13 }
 0x16a   : > { %3954 = vmatpush1.bf16.msra.mxu0 %v5725_v2  ;;  %3985 = vmatprep.mubr.bf16.mxu0 %v6316_v47 }
 0x16b   : > { %3929 = vmatpush2.bf16.msra.mxu1 %v5722_v1  ;;  %3955 = vmatprep.subr.bf16.mxu0 %v5733_v4  ;;  %v5790_v4 = vld [vmem:[#allocation5 + $0x96c] ss:$20 sps:$4 sm:$0xff]  }
 0x16c   : > { %3930 = vmatprep.subr.bf16.mxu1 %v5730_v3  ;;  %v5785_v3 = vld [vmem:[#allocation5 + $0xad0] ss:$20 sps:$4 sm:$0xff]  }
 0x16e   : > { %3956 = vmatpush1.bf16.msra.mxu0 %v5731_v6  ;;  %v5793_v6 = vld [vmem:[#allocation5 + $0xaac] ss:$20 sps:$4 sm:$0xff]  }
 0x16f   : > { %3931 = vmatpush2.bf16.msra.mxu1 %v5728_v5  ;;  %3957 = vmatprep.subr.bf16.mxu0 %v5739_v8  ;;  %v5791_v8 = vld [vmem:[#allocation5 + $0xaa8] ss:$20 sps:$4 sm:$0xff]  }
 0x170   : > { %3932 = vmatprep.subr.bf16.mxu1 %v5736_v7 }
 0x172   : > { %3958 = vmatpush1.bf16.msra.mxu0 %v5737_v10  ;;  %v5799_v10 = vld [vmem:[#allocation5 + $0xa84] ss:$20 sps:$4 sm:$0xff]  }
 0x173   : > { %3933 = vmatpush2.bf16.msra.mxu1 %v5734_v9  ;;  %3959 = vmatprep.subr.bf16.mxu0 %v5745_v14  ;;  %v5796_v9 = vld [vmem:[#allocation5 + $0x944] ss:$20 sps:$4 sm:$0xff]   ;;  %v5797_v14 = vld [vmem:[#allocation5 + $0xa80] ss:$20 sps:$4 sm:$0xff]  }
 0x174   : > { %3934 = vmatprep.subr.bf16.mxu1 %v5742_v11  ;;  %v5794_v11 = vld [vmem:[#allocation5 + $0x940] ss:$20 sps:$4 sm:$0xff]  }
 0x176   : > { %3960 = vmatpush1.bf16.msra.mxu0 %v5743_v16  ;;  %v5805_v16 = vld [vmem:[#allocation5 + $0xa5c] ss:$20 sps:$4 sm:$0xff]  }
 0x177   : > { %3935 = vmatpush2.bf16.msra.mxu1 %v5740_v15  ;;  %3961 = vmatprep.subr.bf16.mxu0 %v5751_v19  ;;  %v5802_v15 = vld [vmem:[#allocation5 + $0x91c] ss:$20 sps:$4 sm:$0xff]   ;;  %v5803_v19 = vld [vmem:[#allocation5 + $0xa58] ss:$20 sps:$4 sm:$0xff]  }
 0x178   : > { %3936 = vmatprep.subr.bf16.mxu1 %v5748_v17  ;;  %v5800_v17 = vld [vmem:[#allocation5 + $0x918] ss:$20 sps:$4 sm:$0xff]  }
 0x17a   : > { %3962 = vmatpush1.bf16.msra.mxu0 %v5749_v21  ;;  %v5811_v21 = vld [vmem:[#allocation5 + $0xa34] ss:$20 sps:$4 sm:$0xff]  }
 0x17b   : > { %3937 = vmatpush2.bf16.msra.mxu1 %v5746_v20  ;;  %3963 = vmatprep.subr.bf16.mxu0 %v5757_v23  ;;  %v5808_v20 = vld [vmem:[#allocation5 + $0x8f4] ss:$20 sps:$4 sm:$0xff]   ;;  %v5809_v23 = vld [vmem:[#allocation5 + $0xa30] ss:$20 sps:$4 sm:$0xff]  }
 0x17c   : > { %3938 = vmatprep.subr.bf16.mxu1 %v5754_v22  ;;  %v5806_v22 = vld [vmem:[#allocation5 + $0x8f0] ss:$20 sps:$4 sm:$0xff]  }
 0x17e   : > { %3964 = vmatpush1.bf16.msra.mxu0 %v5755_v26  ;;  %v5817_v26 = vld [vmem:[#allocation5 + $0xa0c] ss:$20 sps:$4 sm:$0xff]  }
 0x17f   : > { %3939 = vmatpush2.bf16.msra.mxu1 %v5752_v25  ;;  %3965 = vmatprep.subr.bf16.mxu0 %v5763_v29  ;;  %v5814_v25 = vld [vmem:[#allocation5 + $0x8cc] ss:$20 sps:$4 sm:$0xff]   ;;  %v5815_v29 = vld [vmem:[#allocation5 + $0xa08] ss:$20 sps:$4 sm:$0xff]  }
 0x180   : > { %3940 = vmatprep.subr.bf16.mxu1 %v5760_v27  ;;  %v5812_v27 = vld [vmem:[#allocation5 + $0x8c8] ss:$20 sps:$4 sm:$0xff]  }
 0x182   : > { %3966 = vmatpush1.bf16.msra.mxu0 %v5761_v33  ;;  %v5823_v33 = vld [vmem:[#allocation5 + $0xda4] ss:$20 sps:$4 sm:$0xff]  }
 0x183   : > { %3941 = vmatpush2.bf16.msra.mxu1 %v5758_v32  ;;  %3967 = vmatprep.subr.bf16.mxu0 %v5769_v35  ;;  %v5820_v32 = vld [vmem:[#allocation5 + $0xc64] ss:$20 sps:$4 sm:$0xff]   ;;  %v5821_v35 = vld [vmem:[#allocation5 + $0xda0] ss:$20 sps:$4 sm:$0xff]  }
 0x184   : > { %3942 = vmatprep.subr.bf16.mxu1 %v5766_v34  ;;  %v5818_v34 = vld [vmem:[#allocation5 + $0xc60] ss:$20 sps:$4 sm:$0xff]  }
 0x186   : > { %3968 = vmatpush1.bf16.msra.mxu0 %v5767_v37  ;;  %v5829_v37 = vld [vmem:[#allocation5 + $0xd7c] ss:$20 sps:$4 sm:$0xff]  }
 0x187   : > { %3943 = vmatpush2.bf16.msra.mxu1 %v5764_v36  ;;  %3969 = vmatprep.subr.bf16.mxu0 %v5772_v38  ;;  %v5826_v36 = vld [vmem:[#allocation5 + $0xc3c] ss:$20 sps:$4 sm:$0xff]   ;;  %v5824_v38 = vld [vmem:[#allocation5 + $0xc38] ss:$20 sps:$4 sm:$0xff]  }
 0x188   : > { %3994 = vmatprep.subr.bf16.mxu1 %v5775_v39  ;;  %v5827_v39 = vld [vmem:[#allocation5 + $0xd78] ss:$20 sps:$4 sm:$0xff]  }
 0x189   : > { %v3659_v48 = vpop.f32.mrf.mxu0 }
 0x18a   : > { %3945 = vmatmul.mubr.bf16.vlgmr.msra.gmra.mxu1 %v6322_v28  ;;  %v3700_v49 = vpop.f32.mrf.mxu1  ;;  %v3660_v50 = vadd.f32 %v3659_v48, %v6352_v18  ;;  %3970 = vmatpush2.bf16.msra.mxu0 %v5770_v40  ;;  %v5782_v18 = vld [vmem:[#allocation5 + $0x990] ss:$20 sps:$4 sm:$0xff]   ;;  %v5832_v40 = vld [vmem:[#allocation5 + $0xc14] ss:$20 sps:$4 sm:$0xff]   ;;  %v5838_v48 = vld [vmem:[#allocation5 + $0xbec] ss:$20 sps:$4 sm:$0xff]  }
 0x18b   : > { %3995 = vmatpush1.bf16.msra.mxu1 %v5773_v41  ;;  %v3661_v58 = vpop.f32.mrf.mxu0  ;;  %3971 = vmatprep.subr.bf16.mxu0 %v5778_v44  ;;  %v5835_v41 = vld [vmem:[#allocation5 + $0xd54] ss:$20 sps:$4 sm:$0xff]   ;;  %v5830_v44 = vld [vmem:[#allocation5 + $0xc10] ss:$20 sps:$4 sm:$0xff]  }
 0x18c   : > { %v3702_v59 = vpop.f32.mrf.mxu1  ;;  %3996 = vmatprep.subr.bf16.mxu1 %v5781_v45  ;;  %v3662_v61 = vadd.f32 %v3661_v58, %v6354_v24  ;;  %v6362_v62 = vadd.f32 %v3700_v49, %v3660_v50  ;;  %4026 = vmatprep.mubr.bf16.mxu1 %v6330_v42  ;;  %v5788_v24 = vld [vmem:[#allocation5 + $0x968] ss:$20 sps:$4 sm:$0xff]   ;;  %v5833_v45 = vld [vmem:[#allocation5 + $0xd50] ss:$20 sps:$4 sm:$0xff]   ;;  %v5841_v49 = vld [vmem:[#allocation5 + $0xd2c] ss:$20 sps:$4 sm:$0xff]  }
 0x18d   : > { %v3663_v63 = vpop.f32.mrf.mxu0  ;;  %v5836_v50 = vld [vmem:[#allocation5 + $0xbe8] ss:$20 sps:$4 sm:$0xff]   ;;  %v5842_v58 = vld [vmem:[#allocation5 + $0xbc0] ss:$20 sps:$4 sm:$0xff]  }
 0x18e   : > { %v3704_v1 = vpop.f32.mrf.mxu1  ;;  %v6365_v2 = vadd.f32 %v3702_v59, %v3662_v61  ;;  %3972 = vmatpush2.bf16.msra.mxu0 %v5776_v51  ;;  %v5839_v51 = vld [vmem:[#allocation5 + $0xd28] ss:$20 sps:$4 sm:$0xff]   ;;  %v5845_v59 = vld [vmem:[#allocation5 + $0xd00] ss:$20 sps:$4 sm:$0xff]   ;;  %v5848_v63 = vld [vmem:[#allocation5 + $0xb98] ss:$20 sps:$4 sm:$0xff]  }
 0x18f   : > { %3997 = vmatpush1.bf16.msra.mxu1 %v5779_v53  ;;  %v3664_v5 = vpop.f32.mrf.mxu0  ;;  %3973 = vmatprep.subr.bf16.mxu0 %v5784_v57  ;;  %v5844_v53 = vld [vmem:[#allocation5 + $0xbc4] ss:$20 sps:$4 sm:$0xff]   ;;  %v5853_v61 = vld [vmem:[#allocation5 + $0xcdc] ss:$20 sps:$4 sm:$0xff]  }
 0x190   : > { %3998 = vmatprep.subr.bf16.mxu1 %v5787_v60  ;;  %v3705_v7 = vpop.f32.mrf.mxu1  ;;  %v5847_v57 = vld [vmem:[#allocation5 + $0xd04] ss:$20 sps:$4 sm:$0xff]   ;;  %v5850_v60 = vld [vmem:[#allocation5 + $0xb9c] ss:$20 sps:$4 sm:$0xff]  }
 0x191   : > { %v5851_v1 = vld [vmem:[#allocation5 + $0xcd8] ss:$20 sps:$4 sm:$0xff]   ;;  %v5857_v5 = vld [vmem:[#allocation5 + $0xcb0] ss:$20 sps:$4 sm:$0xff]  }
 0x192   : > { %3974 = vmatpush2.bf16.msra.mxu0 %v5782_v18  ;;  %v5856_v18 = vld [vmem:[#allocation5 + $0xb74] ss:$20 sps:$4 sm:$0xff]   ;;  %v5865_v7 = vld [vmem:[#allocation5 + $0xc8c] ss:$20 sps:$4 sm:$0xff]  }
 0x193   : > { %3999 = vmatpush1.bf16.msra.mxu1 %v5785_v3  ;;  %3975 = vmatprep.subr.bf16.mxu0 %v5790_v4  ;;  %v5859_v3 = vld [vmem:[#allocation5 + $0xcb4] ss:$20 sps:$4 sm:$0xff]   ;;  %v5854_v4 = vld [vmem:[#allocation5 + $0xb70] ss:$20 sps:$4 sm:$0xff]  }
 0x194   : > { %4000 = vmatprep.subr.bf16.mxu1 %v5793_v6  ;;  %v5862_v6 = vld [vmem:[#allocation5 + $0xb4c] ss:$20 sps:$4 sm:$0xff]  }
 0x196   : > { %3976 = vmatpush2.bf16.msra.mxu0 %v5788_v24  ;;  %v5860_v24 = vld [vmem:[#allocation5 + $0xb48] ss:$20 sps:$4 sm:$0xff]  }
 0x197   : > { %4001 = vmatpush1.bf16.msra.mxu1 %v5791_v8  ;;  %3977 = vmatprep.subr.bf16.mxu0 %v5796_v9  ;;  %v5863_v8 = vld [vmem:[#allocation5 + $0xc88] ss:$20 sps:$4 sm:$0xff]   ;;  %v5868_v9 = vld [vmem:[#allocation5 + $0xee4] ss:$20 sps:$4 sm:$0xff]  }
 0x198   : > { %4002 = vmatprep.subr.bf16.mxu1 %v5799_v10  ;;  %v5871_v10 = vld [vmem:[#allocation5 + $0x1024] ss:$20 sps:$4 sm:$0xff]  }
 0x19a   : > { %3978 = vmatpush2.bf16.msra.mxu0 %v5794_v11  ;;  %v5866_v11 = vld [vmem:[#allocation5 + $0xee0] ss:$20 sps:$4 sm:$0xff]  }
 0x19b   : > { %4003 = vmatpush1.bf16.msra.mxu1 %v5797_v14  ;;  %3979 = vmatprep.subr.bf16.mxu0 %v5802_v15  ;;  %v5869_v14 = vld [vmem:[#allocation5 + $0x1020] ss:$20 sps:$4 sm:$0xff]   ;;  %v5874_v15 = vld [vmem:[#allocation5 + $0xebc] ss:$20 sps:$4 sm:$0xff]  }
 0x19c   : > { %4004 = vmatprep.subr.bf16.mxu1 %v5805_v16  ;;  %v5877_v16 = vld [vmem:[#allocation5 + $0xffc] ss:$20 sps:$4 sm:$0xff]  }
 0x19e   : > { %3980 = vmatpush2.bf16.msra.mxu0 %v5800_v17 }
 0x19f   : > { %4005 = vmatpush1.bf16.msra.mxu1 %v5803_v19  ;;  %3981 = vmatprep.subr.bf16.mxu0 %v5808_v20  ;;  %v5872_v20 = vld [vmem:[#allocation5 + $0xeb8] ss:$20 sps:$4 sm:$0xff]  }
 0x1a0   : > { %4006 = vmatprep.subr.bf16.mxu1 %v5811_v21  ;;  %v5875_v21 = vld [vmem:[#allocation5 + $0xff8] ss:$20 sps:$4 sm:$0xff]  }
 0x1a2   : > { %3982 = vmatpush2.bf16.msra.mxu0 %v5806_v22 }
 0x1a3   : > { %4007 = vmatpush1.bf16.msra.mxu1 %v5809_v23  ;;  %3983 = vmatprep.subr.bf16.mxu0 %v5814_v25  ;;  %v5880_v25 = vld [vmem:[#allocation5 + $0xe94] ss:$20 sps:$4 sm:$0xff]  }
 0x1a4   : > { %4008 = vmatprep.subr.bf16.mxu1 %v5817_v26  ;;  %v5883_v26 = vld [vmem:[#allocation5 + $0xfd4] ss:$20 sps:$4 sm:$0xff]  }
 0x1a6   : > { %3984 = vmatpush2.bf16.msra.mxu0 %v5812_v27 }
 0x1a7   : > { %4009 = vmatpush1.bf16.msra.mxu1 %v5815_v29  ;;  %4035 = vmatprep.subr.bf16.mxu0 %v5823_v33  ;;  %v5881_v33 = vld [vmem:[#allocation5 + $0xfd0] ss:$20 sps:$4 sm:$0xff]  }
 0x1a8   : > { %4010 = vmatprep.subr.bf16.mxu1 %v5820_v32  ;;  %v5878_v32 = vld [vmem:[#allocation5 + $0xe90] ss:$20 sps:$4 sm:$0xff]  }
 0x1a9   : > { %3986 = vmatmul.mubr.bf16.vlgmr.msra.gmra.mxu0 %v6324_v31 }
 0x1aa   : > { %4036 = vmatpush1.bf16.msra.mxu0 %v5821_v35  ;;  %4067 = vmatprep.mubr.bf16.mxu0 %v6332_v43  ;;  %v5886_v35 = vld [vmem:[#allocation5 + $0xe6c] ss:$20 sps:$4 sm:$0xff]  }
 0x1ab   : > { %4011 = vmatpush2.bf16.msra.mxu1 %v5818_v34  ;;  %4037 = vmatprep.subr.bf16.mxu0 %v5829_v37 }
 0x1ac   : > { %4012 = vmatprep.subr.bf16.mxu1 %v5826_v36  ;;  %v5889_v36 = vld [vmem:[#allocation5 + $0xfac] ss:$20 sps:$4 sm:$0xff]  }
 0x1ae   : > { %4038 = vmatpush1.bf16.msra.mxu0 %v5827_v39  ;;  %v5887_v39 = vld [vmem:[#allocation5 + $0xfa8] ss:$20 sps:$4 sm:$0xff]  }
 0x1af   : > { %4013 = vmatpush2.bf16.msra.mxu1 %v5824_v38  ;;  %4039 = vmatprep.subr.bf16.mxu0 %v5835_v41  ;;  %v5884_v38 = vld [vmem:[#allocation5 + $0xe68] ss:$20 sps:$4 sm:$0xff]   ;;  %v5890_v41 = vld [vmem:[#allocation5 + $0xe40] ss:$20 sps:$4 sm:$0xff]  }
 0x1b0   : > { %4014 = vmatprep.subr.bf16.mxu1 %v5832_v40  ;;  %v5892_v40 = vld [vmem:[#allocation5 + $0xe44] ss:$20 sps:$4 sm:$0xff]  }
 0x1b2   : > { %4040 = vmatpush1.bf16.msra.mxu0 %v5833_v45  ;;  %v5898_v45 = vld [vmem:[#allocation5 + $0xe1c] ss:$20 sps:$4 sm:$0xff]  }
 0x1b3   : > { %4015 = vmatpush2.bf16.msra.mxu1 %v5830_v44  ;;  %4041 = vmatprep.subr.bf16.mxu0 %v5841_v49  ;;  %v5893_v44 = vld [vmem:[#allocation5 + $0xf80] ss:$20 sps:$4 sm:$0xff]   ;;  %v5896_v49 = vld [vmem:[#allocation5 + $0xe18] ss:$20 sps:$4 sm:$0xff]  }
 0x1b4   : > { %4016 = vmatprep.subr.bf16.mxu1 %v5838_v48  ;;  %v5901_v48 = vld [vmem:[#allocation5 + $0xf5c] ss:$20 sps:$4 sm:$0xff]  }
 0x1b6   : > { %4042 = vmatpush1.bf16.msra.mxu0 %v5839_v51  ;;  %v5904_v51 = vld [vmem:[#allocation5 + $0xdf4] ss:$20 sps:$4 sm:$0xff]  }
 0x1b7   : > { %4017 = vmatpush2.bf16.msra.mxu1 %v5836_v50  ;;  %4043 = vmatprep.subr.bf16.mxu0 %v5847_v57  ;;  %v5899_v50 = vld [vmem:[#allocation5 + $0xf58] ss:$20 sps:$4 sm:$0xff]   ;;  %v5902_v57 = vld [vmem:[#allocation5 + $0xdf0] ss:$20 sps:$4 sm:$0xff]  }
 0x1b8   : > { %4018 = vmatprep.subr.bf16.mxu1 %v5844_v53  ;;  %v5907_v53 = vld [vmem:[#allocation5 + $0xf34] ss:$20 sps:$4 sm:$0xff]  }
 0x1ba   : > { %4044 = vmatpush1.bf16.msra.mxu0 %v5845_v59  ;;  %v5910_v59 = vld [vmem:[#allocation5 + $0xdcc] ss:$20 sps:$4 sm:$0xff]  }
 0x1bb   : > { %4019 = vmatpush2.bf16.msra.mxu1 %v5842_v58  ;;  %4045 = vmatprep.subr.bf16.mxu0 %v5853_v61  ;;  %v5905_v58 = vld [vmem:[#allocation5 + $0xf30] ss:$20 sps:$4 sm:$0xff]   ;;  %v5908_v61 = vld [vmem:[#allocation5 + $0xdc8] ss:$20 sps:$4 sm:$0xff]  }
 0x1bc   : > { %4020 = vmatprep.subr.bf16.mxu1 %v5850_v60  ;;  %v5913_v60 = vld [vmem:[#allocation5 + $0xf0c] ss:$20 sps:$4 sm:$0xff]  }
 0x1be   : > { %4046 = vmatpush1.bf16.msra.mxu0 %v5851_v1  ;;  %v5914_v1 = vld [vmem:[#allocation5 + $0x268] ss:$20 sps:$4 sm:$0xff]  }
 0x1bf   : > { %4021 = vmatpush2.bf16.msra.mxu1 %v5848_v63  ;;  %4047 = vmatprep.subr.bf16.mxu0 %v5859_v3  ;;  %v5911_v63 = vld [vmem:[#allocation5 + $0xf08] ss:$20 sps:$4 sm:$0xff]  }
 0x1c0   : > { %4022 = vmatprep.subr.bf16.mxu1 %v5856_v18  ;;  %v5915_v18 = vld [vmem:[#allocation5 + $0x4e8] ss:$20 sps:$4 sm:$0xff]  }
 0x1c2   : > { %4048 = vmatpush1.bf16.msra.mxu0 %v5857_v5  ;;  %v5917_v5 = vld [vmem:[#allocation5 + $0x3a8] ss:$20 sps:$4 sm:$0xff]  }
 0x1c3   : > { %4023 = vmatpush2.bf16.msra.mxu1 %v5854_v4  ;;  %4049 = vmatprep.subr.bf16.mxu0 %v5865_v7  ;;  %v5916_v4 = vld [vmem:[#allocation5 + $0x128] ss:$20 sps:$4 sm:$0xff]   ;;  %v5918_v7 = vld [vmem:[#allocation5 + $0x240] ss:$20 sps:$4 sm:$0xff]  }
 0x1c4   : > { %4024 = vmatprep.subr.bf16.mxu1 %v5862_v6 }
 0x1c6   : > { %4050 = vmatpush1.bf16.msra.mxu0 %v5863_v8 }
 0x1c7   : > { %4025 = vmatpush2.bf16.msra.mxu1 %v5860_v24  ;;  %4051 = vmatprep.subr.bf16.mxu0 %v5868_v9  ;;  %v5919_v24 = vld [vmem:[#allocation5 + $0x4c0] ss:$20 sps:$4 sm:$0xff]  }
 0x1c8   : > { %4076 = vmatprep.subr.bf16.mxu1 %v5871_v10 }
 0x1c9   : > { %v6369_v17 = vpop.f32.mrf.mxu0 }
 0x1ca   : > { %4027 = vmatmul.mubr.bf16.vlgmr.msra.gmra.mxu1 %v6338_v52  ;;  %v6372_v19 = vpop.f32.mrf.mxu1  ;;  %4052 = vmatpush2.bf16.msra.mxu0 %v5866_v11  ;;  %v3742_v3 = vadd.f32 %v6369_v17, %v6362_v62  ;;  %v5920_v62 = vld [vmem:[#allocation5 + $0x100] ss:$20 sps:$4 sm:$0xff]  }
 0x1cb   : > { %4077 = vmatpush1.bf16.msra.mxu1 %v5869_v14  ;;  %v6374_v22 = vpop.f32.mrf.mxu0  ;;  %4053 = vmatprep.subr.bf16.mxu0 %v5874_v15  ;;  %v5921_v11 = vld [vmem:[#allocation5 + $0x380] ss:$20 sps:$4 sm:$0xff]  }
 0x1cc   : > { %v6376_v23 = vpop.f32.mrf.mxu1  ;;  %4078 = vmatprep.subr.bf16.mxu1 %v5877_v16  ;;  %4108 = vmatprep.mubr.bf16.mxu1 %v6156_v0  ;;  %v5895_v0 = vld [vmem:[#allocation5 + $0xf84] ss:$20 sps:$4 sm:$0xff]   ;;  %v3744_v6 = vadd.f32 %v6374_v22, %v6365_v2  ;;  %v3783_v8 = vadd.f32 %v6372_v19, %v3742_v3  ;;  %v5949_v3 = vld [vmem:[#allocation5 + $0x8a8] ss:$20 sps:$4 sm:$0xff]  }
 0x1cd   : > { %v3745_v27 = vpop.f32.mrf.mxu0  ;;  %v5922_v2 = vld [vmem:[#allocation5 + $0x218] ss:$20 sps:$4 sm:$0xff]  }
 0x1ce   : > { %v3786_v29 = vpop.f32.mrf.mxu1  ;;  %4054 = vmatpush2.bf16.msra.mxu0 %v5872_v20  ;;  %v3785_v14 = vadd.f32 %v6376_v23, %v3744_v6  ;;  %v5923_v16 = vld [vmem:[#allocation5 + $0x498] ss:$20 sps:$4 sm:$0xff]   ;;  %v5926_v23 = vld [vmem:[#allocation5 + $0x1f0] ss:$20 sps:$4 sm:$0xff]  }
 0x1cf   : > { %4079 = vmatpush1.bf16.msra.mxu1 %v5875_v21  ;;  %v3746_v34 = vpop.f32.mrf.mxu0  ;;  %4055 = vmatprep.subr.bf16.mxu0 %v5880_v25  ;;  %v5924_v20 = vld [vmem:[#allocation5 + $0xd8] ss:$20 sps:$4 sm:$0xff]   ;;  %v5927_v25 = vld [vmem:[#allocation5 + $0x470] ss:$20 sps:$4 sm:$0xff]   ;;  %v5932_v29 = vld [vmem:[#allocation5 + $0x88] ss:$20 sps:$4 sm:$0xff]  }
 0x1d0   : > { %4080 = vmatprep.subr.bf16.mxu1 %v5883_v26  ;;  %v3787_v37 = vpop.f32.mrf.mxu1  ;;  %v5925_v21 = vld [vmem:[#allocation5 + $0x358] ss:$20 sps:$4 sm:$0xff]   ;;  %v5928_v26 = vld [vmem:[#allocation5 + $0xb0] ss:$20 sps:$4 sm:$0xff]   ;;  %v5935_v34 = vld [vmem:[#allocation5 + $0x420] ss:$20 sps:$4 sm:$0xff]  }
 0x1d1   : > { %v5929_v27 = vld [vmem:[#allocation5 + $0x330] ss:$20 sps:$4 sm:$0xff]   ;;  %v5936_v37 = vld [vmem:[#allocation5 + $0x60] ss:$20 sps:$4 sm:$0xff]  }
 0x1d2   : > { %4056 = vmatpush2.bf16.msra.mxu0 %v5878_v32  ;;  %v5933_v32 = vld [vmem:[#allocation5 + $0x308] ss:$20 sps:$4 sm:$0xff]  }
 0x1d3   : > { %4081 = vmatpush1.bf16.msra.mxu1 %v5881_v33  ;;  %4057 = vmatprep.subr.bf16.mxu0 %v5886_v35  ;;  %v5934_v33 = vld [vmem:[#allocation5 + $0x1a0] ss:$20 sps:$4 sm:$0xff]  }
 0x1d4   : > { %4082 = vmatprep.subr.bf16.mxu1 %v5889_v36 }
 0x1d6   : > { %4058 = vmatpush2.bf16.msra.mxu0 %v5884_v38  ;;  %v5937_v38 = vld [vmem:[#allocation5 + $0x2e0] ss:$20 sps:$4 sm:$0xff]  }
 0x1d7   : > { %4083 = vmatpush1.bf16.msra.mxu1 %v5887_v39  ;;  %4059 = vmatprep.subr.bf16.mxu0 %v5892_v40  ;;  %v5938_v39 = vld [vmem:[#allocation5 + $0x178] ss:$20 sps:$4 sm:$0xff]  }
 0x1d8   : > { %4084 = vmatprep.subr.bf16.mxu1 %v5895_v0  ;;  %v5939_v0 = vld [vmem:[#allocation5 + $0x3f8] ss:$20 sps:$4 sm:$0xff]  }
 0x1da   : > { %4060 = vmatpush2.bf16.msra.mxu0 %v5890_v41 }
 0x1db   : > { %4085 = vmatpush1.bf16.msra.mxu1 %v5893_v44  ;;  %4061 = vmatprep.subr.bf16.mxu0 %v5898_v45 }
 0x1dc   : > { %4086 = vmatprep.subr.bf16.mxu1 %v5901_v48 }
 0x1de   : > { %4062 = vmatpush2.bf16.msra.mxu0 %v5896_v49 }
 0x1df   : > { %4087 = vmatpush1.bf16.msra.mxu1 %v5899_v50  ;;  %4063 = vmatprep.subr.bf16.mxu0 %v5904_v51  ;;  %v5940_v50 = vld [vmem:[#allocation5 + $0x38] ss:$20 sps:$4 sm:$0xff]  }
 0x1e0   : > { %4088 = vmatprep.subr.bf16.mxu1 %v5907_v53  ;;  %v5941_v51 = vld [vmem:[#allocation5 + $0x2b8] ss:$20 sps:$4 sm:$0xff]  }
 0x1e2   : > { %4064 = vmatpush2.bf16.msra.mxu0 %v5902_v57  ;;  %v5942_v57 = vld [vmem:[#allocation5 + $0x150] ss:$20 sps:$4 sm:$0xff]  }
 0x1e3   : > { %4089 = vmatpush1.bf16.msra.mxu1 %v5905_v58  ;;  %4065 = vmatprep.subr.bf16.mxu0 %v5910_v59  ;;  %v5943_v58 = vld [vmem:[#allocation5 + $0x3d0] ss:$20 sps:$4 sm:$0xff]  }
 0x1e4   : > { %4090 = vmatprep.subr.bf16.mxu1 %v5913_v60  ;;  %v5944_v60 = vld [vmem:[#allocation5 + $0x10] ss:$20 sps:$4 sm:$0xff]  }
 0x1e6   : > { %4066 = vmatpush2.bf16.msra.mxu0 %v5908_v61  ;;  %v5945_v61 = vld [vmem:[#allocation5 + $0x290] ss:$20 sps:$4 sm:$0xff]  }
 0x1e7   : > { %4091 = vmatpush1.bf16.msra.mxu1 %v5911_v63  ;;  %5062 = vmatprep.subr.bf16.mxu0 %v5914_v1  ;;  %v5946_v63 = vld [vmem:[#allocation5 + $0x768] ss:$20 sps:$4 sm:$0xff]  }
 0x1e8   : > { %5084 = vmatprep.subr.bf16.mxu1 %v5915_v18  ;;  %v5948_v1 = vld [vmem:[#allocation5 + $0x9e8] ss:$20 sps:$4 sm:$0xff]  }
 0x1e9   : > { %v3823_v9 = vpop.f32.mrf.mxu0  ;;  %4068 = vmatmul.mubr.bf16.vlgmr.msra.gmra.mxu0 %v6340_v56  ;;  %v5947_v18 = vld [vmem:[#allocation5 + $0x628] ss:$20 sps:$4 sm:$0xff]  }
 0x1ea   : > { %4109 = vmatmul.mubr.bf16.vlgmr.msra.gmra.mxu1 %v6347_v30  ;;  %v3824_v10 = vadd.f32 %v3823_v9, %v3783_v8  ;;  %5063 = vmatpush3.bf16.msra.mxu0 %v5916_v4  ;;  %v5950_v4 = vld [vmem:[#allocation5 + $0x740] ss:$20 sps:$4 sm:$0xff]   ;;  %v5954_v8 = vld [vmem:[#allocation5 + $0x718] ss:$20 sps:$4 sm:$0xff]  }
 0x1eb   : > { %5085 = vmatpush3.bf16.msra.mxu1 %v5917_v5  ;;  %v3825_v15 = vpop.f32.mrf.mxu0  ;;  %5064 = vmatprep.subr.bf16.mxu0 %v5918_v7  ;;  %v5952_v5 = vld [vmem:[#allocation5 + $0x9c0] ss:$20 sps:$4 sm:$0xff]   ;;  %v5956_v9 = vld [vmem:[#allocation5 + $0x998] ss:$20 sps:$4 sm:$0xff]  }
 0x1ec   : > { %5086 = vmatprep.subr.bf16.mxu1 %v5919_v24  ;;  %6018 = vrsqrt.f32 %v3824_v10  ;;  %4149 = vmatprep.mubr.bf16.mxu0 %v6298_v54  ;;  %v3826_v17 = vadd.f32 %v3825_v15, %v3785_v14  ;;  %v5930_v54 = vld [vmem:[#allocation5 + $0x1c8] ss:$20 sps:$4 sm:$0xff]   ;;  %vm4399_vm0 = vcmp.eq.f32.partialorder %v3824_v10, inf  ;;  %v4402_v40 = vand.u32 2147483648, %v3824_v10  ;;  %v5951_v7 = vld [vmem:[#allocation5 + $0x600] ss:$20 sps:$4 sm:$0xff]  }
 0x1ed   : > { %4189 = vmatprep.mubr.bf16.mxu1 %v6300_v55  ;;  %v3827_v19 = vpop.f32.mrf.mxu0  ;;  %v5931_v55 = vld [vmem:[#allocation5 + $0x448] ss:$20 sps:$4 sm:$0xff]   ;;  %vm4401_vm1 = vcmp.eq.f32.partialorder %v3824_v10, 0.0  ;;  %v5953_v24 = vld [vmem:[#allocation5 + $0x880] ss:$20 sps:$4 sm:$0xff]  }
 0x1ee   : > { %5065 = vmatpush3.bf16.msra.mxu0 %v5920_v62  ;;  %6020 = vrsqrt.f32 %v3826_v17  ;;  %vm4406_vm2 = vcmp.eq.f32.partialorder %v3826_v17, inf  ;;  %v4409_v49 = vand.u32 2147483648, %v3826_v17  ;;  %vm4408_vm3 = vcmp.eq.f32.partialorder %v3826_v17, 0.0  ;;  %v5960_v14 = vld [vmem:[#allocation5 + $0x970] ss:$20 sps:$4 sm:$0xff]  }
 0x1ef   : > { %5087 = vmatpush3.bf16.msra.mxu1 %v5921_v11  ;;  %v3828_v22 = vpop.f32.mrf.mxu0  ;;  %5066 = vmatprep.subr.bf16.mxu0 %v5922_v2  ;;  %v5958_v11 = vld [vmem:[#allocation5 + $0x6f0] ss:$20 sps:$4 sm:$0xff]   ;;  %v5965_v19 = vld [vmem:[#allocation5 + $0x808] ss:$20 sps:$4 sm:$0xff]  }
 0x1f0   : > { %5088 = vmatprep.subr.bf16.mxu1 %v5923_v16  ;;  %v5959_v2 = vld [vmem:[#allocation5 + $0x5b0] ss:$20 sps:$4 sm:$0xff]   ;;  %v5967_v22 = vld [vmem:[#allocation5 + $0x560] ss:$20 sps:$4 sm:$0xff]  }
 0x1f1   : > { %v5961_v16 = vld [vmem:[#allocation5 + $0x830] ss:$20 sps:$4 sm:$0xff]  }
 0x1f2   : > { %5067 = vmatpush3.bf16.msra.mxu0 %v5924_v20  ;;  %v5966_v20 = vld [vmem:[#allocation5 + $0x6a0] ss:$20 sps:$4 sm:$0xff]  }
 0x1f3   : > { %5089 = vmatpush3.bf16.msra.mxu1 %v5925_v21  ;;  %5068 = vmatprep.subr.bf16.mxu0 %v5926_v23  ;;  %v5968_v21 = vld [vmem:[#allocation5 + $0x920] ss:$20 sps:$4 sm:$0xff]  }
 0x1f4   : > { %5090 = vmatprep.subr.bf16.mxu1 %v5927_v25  ;;  %v5969_v23 = vld [vmem:[#allocation5 + $0x7e0] ss:$20 sps:$4 sm:$0xff]   ;;  %v5970_v25 = vld [vmem:[#allocation5 + $0x678] ss:$20 sps:$4 sm:$0xff]  }
 0x1f6   : > { %5069 = vmatpush3.bf16.msra.mxu0 %v5928_v26  ;;  %v5972_v26 = vld [vmem:[#allocation5 + $0x8f8] ss:$20 sps:$4 sm:$0xff]  }
 0x1f7   : > { %5091 = vmatpush3.bf16.msra.mxu1 %v5929_v27  ;;  %5070 = vmatprep.subr.bf16.mxu0 %v5930_v54  ;;  %v5971_v27 = vld [vmem:[#allocation5 + $0x538] ss:$20 sps:$4 sm:$0xff]  }
 0x1f8   : > { %5092 = vmatprep.subr.bf16.mxu1 %v5931_v55  ;;  %v5973_v54 = vld [vmem:[#allocation5 + $0x7b8] ss:$20 sps:$4 sm:$0xff]   ;;  %v5974_v55 = vld [vmem:[#allocation5 + $0x650] ss:$20 sps:$4 sm:$0xff]  }
 0x1f9   : > { %v6019_v35 = vpop.eup %6018 }
 0x1fa   : > { %v4398_v36 = vmul.f32 %v6019_v35, %v3824_v10  ;;  %5071 = vmatpush3.bf16.msra.mxu0 %v5932_v29  ;;  %v5976_v29 = vld [vmem:[#allocation5 + $0x8d0] ss:$20 sps:$4 sm:$0xff]   ;;  %v5980_v35 = vld [vmem:[#allocation5 + $0xee8] ss:$20 sps:$4 sm:$0xff]  }
 0x1fb   : > { %5093 = vmatpush3.bf16.msra.mxu1 %v5933_v32  ;;  %5072 = vmatprep.subr.bf16.mxu0 %v5934_v33  ;;  %v6021_v41 = vpop.eup %6020  ;;  %v5975_v32 = vld [vmem:[#allocation5 + $0x510] ss:$20 sps:$4 sm:$0xff]  }
 0x1fc   : > { %5094 = vmatprep.subr.bf16.mxu1 %v5935_v34  ;;  %v4400_v44 = vsel %vm4399_vm0, %v3824_v10, %v4398_v36  ;;  %v4405_v48 = vmul.f32 %v6021_v41, %v3826_v17  ;;  %v5977_v33 = vld [vmem:[#allocation5 + $0x790] ss:$20 sps:$4 sm:$0xff]   ;;  %v5978_v34 = vld [vmem:[#allocation5 + $0xc68] ss:$20 sps:$4 sm:$0xff]   ;;  %v5983_v41 = vld [vmem:[#allocation5 + $0xb00] ss:$20 sps:$4 sm:$0xff]  }
 0x1fd   : > { %v4403_v45 = vsel %vm4401_vm1, %v4402_v40, %v4400_v44  ;;  %v5979_v36 = vld [vmem:[#allocation5 + $0xb28] ss:$20 sps:$4 sm:$0xff]   ;;  %v5985_v44 = vld [vmem:[#allocation5 + $0xd80] ss:$20 sps:$4 sm:$0xff]  }
 0x1fe   : > { %5073 = vmatpush3.bf16.msra.mxu0 %v5936_v37  ;;  %4432 = vst [vmem:[%s6390_s17] sm:$0xff] %v4403_v45  ;;  %v4407_v53 = vsel %vm4406_vm2, %v3826_v17, %v4405_v48  ;;  %v5962_v17 = vld [vmem:[#allocation5 + $0x6c8] ss:$20 sps:$4 sm:$0xff]   ;;  %v5986_v48 = vld [vmem:[#allocation5 + $0xc18] ss:$20 sps:$4 sm:$0xff]  }
 0x1ff   : > { %5095 = vmatpush3.bf16.msra.mxu1 %v5937_v38  ;;  %5074 = vmatprep.subr.bf16.mxu0 %v5938_v39  ;;  %v4410_v59 = vsel %vm4408_vm3, %v4409_v49, %v4407_v53  ;;  %v5981_v37 = vld [vmem:[#allocation5 + $0xda8] ss:$20 sps:$4 sm:$0xff]   ;;  %v5982_v38 = vld [vmem:[#allocation5 + $0xc40] ss:$20 sps:$4 sm:$0xff]   ;;  %v5988_v49 = vld [vmem:[#allocation5 + $0xe98] ss:$20 sps:$4 sm:$0xff]  }
 0x200   : > { %5096 = vmatprep.subr.bf16.mxu1 %v5939_v0  ;;  %4433 = vst [vmem:[%s6390_s17 + $0x8] sm:$0xff] %v4410_v59  ;;  %v5984_v39 = vld [vmem:[#allocation5 + $0xec0] ss:$20 sps:$4 sm:$0xff]   ;;  %v5991_v59 = vld [vmem:[#allocation5 + $0xab0] ss:$20 sps:$4 sm:$0xff]  }
 0x202   : > { %5075 = vmatpush3.bf16.msra.mxu0 %v5940_v50 }
 0x203   : > { %5097 = vmatpush3.bf16.msra.mxu1 %v5941_v51  ;;  %5076 = vmatprep.subr.bf16.mxu0 %v5942_v57  ;;  %v5989_v51 = vld [vmem:[#allocation5 + $0xd58] ss:$20 sps:$4 sm:$0xff]   ;;  %v5990_v57 = vld [vmem:[#allocation5 + $0xbf0] ss:$20 sps:$4 sm:$0xff]  }
 0x204   : > { %5098 = vmatprep.subr.bf16.mxu1 %v5943_v58  ;;  %v5992_v58 = vld [vmem:[#allocation5 + $0xe70] ss:$20 sps:$4 sm:$0xff]  }
 0x206   : > { %5077 = vmatpush3.bf16.msra.mxu0 %v5944_v60  ;;  %v5993_v60 = vld [vmem:[#allocation5 + $0xd30] ss:$20 sps:$4 sm:$0xff]  }
 0x207   : > { %5099 = vmatpush3.bf16.msra.mxu1 %v5945_v61  ;;  %5106 = vmatprep.subr.bf16.mxu0 %v5946_v63  ;;  %v5994_v61 = vld [vmem:[#allocation5 + $0xbc8] ss:$20 sps:$4 sm:$0xff]  }
 0x208   : > { %5128 = vmatprep.subr.bf16.mxu1 %v5948_v1  ;;  %v5997_v63 = vld [vmem:[#allocation5 + $0xd08] ss:$20 sps:$4 sm:$0xff]   ;;  %v5998_v1 = vld [vmem:[#allocation5 + $0xba0] ss:$20 sps:$4 sm:$0xff]  }
 0x209   : > { %4150 = vmatmul.mubr.bf16.vlgmr.msra.gmra.mxu0 %v6306_v12  ;;  %v5955_v12 = vld [vmem:[#allocation5 + $0x5d8] ss:$20 sps:$4 sm:$0xff]  }
 0x20a   : > { %4190 = vmatmul.mubr.bf16.vlgmr.msra.gmra.mxu1 %v6308_v13  ;;  %v6396_v6 = vpop.f32.mrf.mxu1  ;;  %5107 = vmatpush3.bf16.msra.mxu0 %v5947_v18  ;;  %v5957_v13 = vld [vmem:[#allocation5 + $0x858] ss:$20 sps:$4 sm:$0xff]   ;;  %v6000_v18 = vld [vmem:[#allocation5 + $0xe20] ss:$20 sps:$4 sm:$0xff]  }
 0x20b   : > { %5129 = vmatpush3.bf16.msra.mxu1 %v5949_v3  ;;  %5108 = vmatprep.subr.bf16.mxu0 %v5950_v4  ;;  %v5999_v3 = vld [vmem:[#allocation5 + $0xa60] ss:$20 sps:$4 sm:$0xff]  }
 0x20c   : > { %5130 = vmatprep.subr.bf16.mxu1 %v5952_v5  ;;  %v6398_v10 = vpop.f32.mrf.mxu1  ;;  %4229 = vmatprep.mubr.bf16.mxu0 %v6314_v46  ;;  %v5964_v46 = vld [vmem:[#allocation5 + $0x948] ss:$20 sps:$4 sm:$0xff]   ;;  %v6001_v4 = vld [vmem:[#allocation5 + $0xce0] ss:$20 sps:$4 sm:$0xff]   ;;  %v6002_v5 = vld [vmem:[#allocation5 + $0xb78] ss:$20 sps:$4 sm:$0xff]  }
 0x20d   : > { %4269 = vmatprep.mubr.bf16.mxu1 %v6316_v47  ;;  %v5963_v47 = vld [vmem:[#allocation5 + $0x588] ss:$20 sps:$4 sm:$0xff]  }
 0x20e   : > { %v3868_v62 = vpop.f32.mrf.mxu1  ;;  %5109 = vmatpush3.bf16.msra.mxu0 %v5951_v7  ;;  %v6003_v7 = vld [vmem:[#allocation5 + $0xa38] ss:$20 sps:$4 sm:$0xff]  }
 0x20f   : > { %5131 = vmatpush3.bf16.msra.mxu1 %v5953_v24  ;;  %5110 = vmatprep.subr.bf16.mxu0 %v5954_v8  ;;  %v6005_v24 = vld [vmem:[#allocation5 + $0xcb8] ss:$20 sps:$4 sm:$0xff]   ;;  %v6006_v8 = vld [vmem:[#allocation5 + $0xb50] ss:$20 sps:$4 sm:$0xff]  }
 0x210   : > { %5132 = vmatprep.subr.bf16.mxu1 %v5956_v9  ;;  %v3869_v15 = vpop.f32.mrf.mxu1  ;;  %v6008_v9 = vld [vmem:[#allocation5 + $0xdd0] ss:$20 sps:$4 sm:$0xff]  }
 0x211   : > { %v6009_v62 = vld [vmem:[#allocation5 + $0xc90] ss:$20 sps:$4 sm:$0xff]   ;;  %v6011_v15 = vld [vmem:[#allocation5 + $0x1000] ss:$20 sps:$4 sm:$0xff]  }
 0x212   : > { %5111 = vmatpush3.bf16.msra.mxu0 %v5955_v12  ;;  %v6010_v12 = vld [vmem:[#allocation5 + $0x1028] ss:$20 sps:$4 sm:$0xff]  }
 0x213   : > { %5133 = vmatpush3.bf16.msra.mxu1 %v5957_v13  ;;  %5112 = vmatprep.subr.bf16.mxu0 %v5958_v11  ;;  %v6157_v13 = vmov 0.0  }
 0x214   : > { %5134 = vmatprep.subr.bf16.mxu1 %v5960_v14 }
 0x216   : > { %5113 = vmatpush3.bf16.msra.mxu0 %v5959_v2 }
 0x217   : > { %5135 = vmatpush3.bf16.msra.mxu1 %v5961_v16  ;;  %5114 = vmatprep.subr.bf16.mxu0 %v5962_v17 }
 0x218   : > { %5136 = vmatprep.subr.bf16.mxu1 %v5964_v46  ;;  %v6012_v46 = vld [vmem:[#allocation5 + $0xfd8] ss:$20 sps:$4 sm:$0xff]  }
 0x21a   : > { %5115 = vmatpush3.bf16.msra.mxu0 %v5963_v47 }
 0x21b   : > { %5137 = vmatpush3.bf16.msra.mxu1 %v5965_v19  ;;  %5116 = vmatprep.subr.bf16.mxu0 %v5966_v20  ;;  %v6013_v19 = vld [vmem:[#allocation5 + $0xfb0] ss:$20 sps:$4 sm:$0xff]   ;;  %v6016_v20 = vld [vmem:[#allocation5 + $0xf38] ss:$20 sps:$4 sm:$0xff]  }
 0x21c   : > { %5138 = vmatprep.subr.bf16.mxu1 %v5968_v21  ;;  %v6017_v21 = vld [vmem:[#allocation5 + $0xf10] ss:$20 sps:$4 sm:$0xff]  }
 0x21e   : > { %5117 = vmatpush3.bf16.msra.mxu0 %v5967_v22 }
 0x21f   : > { %5139 = vmatpush3.bf16.msra.mxu1 %v5969_v23  ;;  %5118 = vmatprep.subr.bf16.mxu0 %v5970_v25 }
 0x220   : > { %5140 = vmatprep.subr.bf16.mxu1 %v5972_v26 }
 0x222   : > { %5119 = vmatpush3.bf16.msra.mxu0 %v5971_v27 }
 0x223   : > { %5141 = vmatpush3.bf16.msra.mxu1 %v5973_v54  ;;  %5120 = vmatprep.subr.bf16.mxu0 %v5974_v55 }
 0x224   : > { %5142 = vmatprep.subr.bf16.mxu1 %v5976_v29 }
 0x226   : > { %5121 = vmatpush3.bf16.msra.mxu0 %v5975_v32 }
 0x227   : > { %5143 = vmatpush3.bf16.msra.mxu1 %v5977_v33  ;;  %5150 = vmatprep.subr.bf16.mxu0 %v5978_v34 }
 0x228   : > { %5172 = vmatprep.subr.bf16.mxu1 %v5980_v35 }
 0x229   : > { %v3905_v40 = vpop.f32.mrf.mxu0  ;;  %4230 = vmatmul.mubr.bf16.vlgmr.msra.gmra.mxu0 %v6322_v28 }
 0x22a   : > { %4270 = vmatmul.mubr.bf16.vlgmr.msra.gmra.mxu1 %v6324_v31  ;;  %v6405_v0 = vadd.f32 %v3905_v40, %v6396_v6  ;;  %5151 = vmatpush3.bf16.msra.mxu0 %v5979_v36  ;;  %v5987_v31 = vld [vmem:[#allocation5 + $0xad8] ss:$20 sps:$4 sm:$0xff]  }
 0x22b   : > { %5173 = vmatpush3.bf16.msra.mxu1 %v5981_v37  ;;  %v3907_v45 = vpop.f32.mrf.mxu0  ;;  %5152 = vmatprep.subr.bf16.mxu0 %v5982_v38  ;;  %v6004_v6 = vld [vmem:[#allocation5 + $0xdf8] ss:$20 sps:$4 sm:$0xff]  }
 0x22c   : > { %5174 = vmatprep.subr.bf16.mxu1 %v5984_v39  ;;  %v6408_v50 = vadd.f32 %v3907_v45, %v6398_v10  ;;  %4309 = vmatprep.mubr.bf16.mxu0 %v6330_v42  ;;  %v5996_v42 = vld [vmem:[#allocation5 + $0xe48] ss:$20 sps:$4 sm:$0xff]   ;;  %v6007_v10 = vld [vmem:[#allocation5 + $0xa10] ss:$20 sps:$4 sm:$0xff]  }
 0x22d   : > { %4349 = vmatprep.mubr.bf16.mxu1 %v6332_v43  ;;  %v3909_v28 = vpop.f32.mrf.mxu0  ;;  %v5995_v43 = vld [vmem:[#allocation5 + $0xa88] ss:$20 sps:$4 sm:$0xff]  }
 0x22e   : > { %5153 = vmatpush3.bf16.msra.mxu0 %v5983_v41 }
 0x22f   : > { %5175 = vmatpush3.bf16.msra.mxu1 %v5985_v44  ;;  %v3910_v53 = vpop.f32.mrf.mxu0  ;;  %5154 = vmatprep.subr.bf16.mxu0 %v5986_v48 }
 0x230   : > { %5176 = vmatprep.subr.bf16.mxu1 %v5988_v49 }
 0x232   : > { %5155 = vmatpush3.bf16.msra.mxu0 %v5987_v31 }
 0x233   : > { %5177 = vmatpush3.bf16.msra.mxu1 %v5989_v51  ;;  %5156 = vmatprep.subr.bf16.mxu0 %v5990_v57 }
 0x234   : > { %5178 = vmatprep.subr.bf16.mxu1 %v5992_v58 }
 0x236   : > { %5157 = vmatpush3.bf16.msra.mxu0 %v5991_v59 }
 0x237   : > { %5179 = vmatpush3.bf16.msra.mxu1 %v5993_v60  ;;  %5158 = vmatprep.subr.bf16.mxu0 %v5994_v61 }
 0x238   : > { %5180 = vmatprep.subr.bf16.mxu1 %v5996_v42 }
 0x23a   : > { %5159 = vmatpush3.bf16.msra.mxu0 %v5995_v43 }
 0x23b   : > { %5181 = vmatpush3.bf16.msra.mxu1 %v5997_v63  ;;  %5160 = vmatprep.subr.bf16.mxu0 %v5998_v1 }
 0x23c   : > { %5182 = vmatprep.subr.bf16.mxu1 %v6000_v18 }
 0x23e   : > { %5161 = vmatpush3.bf16.msra.mxu0 %v5999_v3 }
 0x23f   : > { %5183 = vmatpush3.bf16.msra.mxu1 %v6001_v4  ;;  %5162 = vmatprep.subr.bf16.mxu0 %v6002_v5 }
 0x240   : > { %5184 = vmatprep.subr.bf16.mxu1 %v6004_v6 }
 0x242   : > { %5163 = vmatpush3.bf16.msra.mxu0 %v6003_v7 }
 0x243   : > { %5185 = vmatpush3.bf16.msra.mxu1 %v6005_v24  ;;  %5164 = vmatprep.subr.bf16.mxu0 %v6006_v8 }
 0x244   : > { %5186 = vmatprep.subr.bf16.mxu1 %v6008_v9 }
 0x246   : > { %5165 = vmatpush3.bf16.msra.mxu0 %v6007_v10 }
 0x247   : > { %5187 = vmatpush3.bf16.msra.mxu1 %v6009_v62  ;;  %5203 = vmatprep.subr.bf16.mxu0 %v6157_v13 }
 0x249   : > { %4310 = vmatmul.mubr.bf16.vlgmr.msra.gmra.mxu0 %v6338_v52  ;;  %v6014_v52 = vld [vmem:[#allocation5 + $0xf88] ss:$20 sps:$4 sm:$0xff]  }
 0x24a   : > { %v3946_v11 = vpop.f32.mrf.mxu1  ;;  %4350 = vmatmul.mubr.bf16.vlgmr.msra.gmra.mxu1 %v6340_v56  ;;  %5204 = vmatpush3.bf16.msra.mxu0 %v6010_v12  ;;  %v6015_v56 = vld [vmem:[#allocation5 + $0xf60] ss:$20 sps:$4 sm:$0xff]  }
 0x24b   : > { %v3947_v14 = vadd.f32 %v3946_v11, %v6405_v0  ;;  %5219 = vmatprep.mubr.msk.bf16.mxu0 %vm6158_vm4, %v6157_v13  ;;  %5205 = vmatprep.subr.bf16.mxu0 %v6157_v13 }
 0x24c   : > { %v3948_v2 = vpop.f32.mrf.mxu1 }
 0x24d   : > { %v3949_v16 = vadd.f32 %v3948_v2, %v6408_v50 }
 0x24e   : > { %v3950_v17 = vpop.f32.mrf.mxu1  ;;  %5206 = vmatpush3.bf16.msra.mxu0 %v6011_v15 }
 0x24f   : > { %5207 = vmatprep.subr.bf16.mxu0 %v6157_v13 }
 0x250   : > { %v3951_v47 = vpop.f32.mrf.mxu1 }
 0x252   : > { %5208 = vmatpush3.bf16.msra.mxu0 %v6012_v46 }
 0x253   : > { %5209 = vmatprep.subr.bf16.mxu0 %v6157_v13 }
 0x256   : > { %5210 = vmatpush3.bf16.msra.mxu0 %v6013_v19 }
 0x257   : > { %5211 = vmatprep.subr.bf16.mxu0 %v6157_v13 }
 0x25a   : > { %5212 = vmatpush3.bf16.msra.mxu0 %v6014_v52 }
 0x25b   : > { %5213 = vmatprep.subr.bf16.mxu0 %v6157_v13 }
 0x25e   : > { %5214 = vmatpush3.bf16.msra.mxu0 %v6015_v56 }
 0x25f   : > { %5215 = vmatprep.subr.bf16.mxu0 %v6157_v13 }
 0x262   : > { %5216 = vmatpush3.bf16.msra.mxu0 %v6016_v20 }
 0x263   : > { %5217 = vmatprep.subr.bf16.mxu0 %v6157_v13 }
 0x266   : > { %5218 = vmatpush3.bf16.msra.mxu0 %v6017_v21 }
 0x269   : > { %v3987_v22 = vpop.f32.mrf.mxu0  ;;  %5220 = vmatmul.mubr.bf16.vlgmr.msra.gmra.mxu0 %v6347_v30 }
 0x26a   : > { %v3988_v32 = vadd.f32 %v3987_v22, %v3947_v14 }
 0x26b   : > { %v3989_v23 = vpop.f32.mrf.mxu0 }
 0x26c   : > { %v3990_v33 = vadd.f32 %v3989_v23, %v3949_v16 }
 0x26d   : > { %v3991_v25 = vpop.f32.mrf.mxu0 }
 0x26f   : > { %v3992_v26 = vpop.f32.mrf.mxu0 }
 0x28a   : > { %v4028_v27 = vpop.f32.mrf.mxu1 }
 0x28b   : > { %v4029_v34 = vadd.f32 %v4028_v27, %v3988_v32 }
 0x28c   : > { %v4030_v54 = vpop.f32.mrf.mxu1 }
 0x28d   : > { %v4031_v37 = vadd.f32 %v4030_v54, %v3990_v33 }
 0x28e   : > { %v4032_v55 = vpop.f32.mrf.mxu1 }
 0x290   : > { %v4033_v29 = vpop.f32.mrf.mxu1 }
 0x2a9   : > { %v4069_v35 = vpop.f32.mrf.mxu0 }
 0x2aa   : > { %v4110_v36 = vpop.f32.mrf.mxu1  ;;  %v4070_v38 = vadd.f32 %v4069_v35, %v4029_v34 }
 0x2ab   : > { %v4071_v39 = vpop.f32.mrf.mxu0 }
 0x2ac   : > { %v4112_v40 = vpop.f32.mrf.mxu1  ;;  %v4072_v0 = vadd.f32 %v4071_v39, %v4031_v37  ;;  %v4111_v41 = vadd.f32 %v4110_v36, %v4070_v38 }
 0x2ad   : > { %v4073_v44 = vpop.f32.mrf.mxu0 }
 0x2ae   : > { %v4114_v30 = vpop.f32.mrf.mxu1  ;;  %6022 = vrsqrt.f32 %v4111_v41  ;;  %v4113_v45 = vadd.f32 %v4112_v40, %v4072_v0  ;;  %vm4413_vm5 = vcmp.eq.f32.partialorder %v4111_v41, inf  ;;  %v4416_v31 = vand.u32 2147483648, %v4111_v41 }
 0x2af   : > { %v4074_v48 = vpop.f32.mrf.mxu0  ;;  %vm4415_vm6 = vcmp.eq.f32.partialorder %v4111_v41, 0.0 }
 0x2b0   : > { %v4115_v49 = vpop.f32.mrf.mxu1  ;;  %6024 = vrsqrt.f32 %v4113_v45  ;;  %vm4420_vm7 = vcmp.eq.f32.partialorder %v4113_v45, inf  ;;  %v4423_v59 = vand.u32 2147483648, %v4113_v45  ;;  %vm4422_vm8 = vcmp.eq.f32.partialorder %v4113_v45, 0.0 }
 0x2bb   : > { %v6023_v50 = vpop.eup %6022 }
 0x2bc   : > { %v4412_v28 = vmul.f32 %v6023_v50, %v4111_v41 }
 0x2bd   : > { %v6025_v51 = vpop.eup %6024 }
 0x2be   : > { %v4414_v53 = vsel %vm4413_vm5, %v4111_v41, %v4412_v28  ;;  %v4419_v58 = vmul.f32 %v6025_v51, %v4113_v45 }
 0x2bf   : > { %v4417_v57 = vsel %vm4415_vm6, %v4416_v31, %v4414_v53 }
 0x2c0   : > { %4434 = vst [vmem:[%s6390_s17 + $0x10] sm:$0xff] %v4417_v57  ;;  %v4421_v60 = vsel %vm4420_vm7, %v4113_v45, %v4419_v58 }
 0x2c1   : > { %v4424_v61 = vsel %vm4422_vm8, %v4423_v59, %v4421_v60 }
 0x2c2   : > { %4435 = vst [vmem:[%s6390_s17 + $0x18] sm:$0xff] %v4424_v61 }
 0x2c9   : > { %v5078_v42 = vpop.f32.mrf.mxu0 }
 0x2ca   : > { %v5100_v43 = vpop.f32.mrf.mxu1 }
 0x2cb   : > { %v5079_v63 = vpop.f32.mrf.mxu0 }
 0x2cc   : > { %v5101_v1 = vpop.f32.mrf.mxu1  ;;  %v5080_v18 = vadd.f32 %v5079_v63, %v5078_v42 }
 0x2cd   : > { %v5102_v3 = vadd.f32 %v5101_v1, %v5100_v43  ;;  %v5081_v4 = vpop.f32.mrf.mxu0 }
 0x2ce   : > { %v5103_v5 = vpop.f32.mrf.mxu1 }
 0x2cf   : > { %v4192_v6 = vadd.f32 %v5102_v3, %v5080_v18  ;;  %v5082_v7 = vpop.f32.mrf.mxu0 }
 0x2d0   : > { %v5104_v24 = vpop.f32.mrf.mxu1 }
 0x2e9   : > { %v5122_v8 = vpop.f32.mrf.mxu0 }
 0x2ea   : > { %v5144_v9 = vpop.f32.mrf.mxu1 }
 0x2eb   : > { %v5123_v10 = vpop.f32.mrf.mxu0 }
 0x2ec   : > { %v5145_v62 = vpop.f32.mrf.mxu1  ;;  %v5124_v56 = vadd.f32 %v5123_v10, %v5122_v8 }
 0x2ed   : > { %v5125_v12 = vpop.f32.mrf.mxu0  ;;  %v5146_v21 = vadd.f32 %v5145_v62, %v5144_v9 }
 0x2ee   : > { %v5147_v13 = vpop.f32.mrf.mxu1  ;;  %v4232_v20 = vadd.f32 %v5124_v56, %v4192_v6 }
 0x2ef   : > { %v5126_v11 = vpop.f32.mrf.mxu0 }
 0x2f0   : > { %v5148_v14 = vpop.f32.mrf.mxu1  ;;  %v4272_v23 = vadd.f32 %v5146_v21, %v4232_v20 }
 0x309   : > { %v5166_v15 = vpop.f32.mrf.mxu0 }
 0x30a   : > { %v5188_v2 = vpop.f32.mrf.mxu1 }
 0x30b   : > { %v5167_v16 = vpop.f32.mrf.mxu0 }
 0x30c   : > { %v5189_v17 = vpop.f32.mrf.mxu1  ;;  %v5168_v22 = vadd.f32 %v5167_v16, %v5166_v15 }
 0x30d   : > { %v5169_v46 = vpop.f32.mrf.mxu0  ;;  %v5190_v26 = vadd.f32 %v5189_v17, %v5188_v2 }
 0x30e   : > { %v5191_v47 = vpop.f32.mrf.mxu1  ;;  %v4312_v25 = vadd.f32 %v5168_v22, %v4272_v23 }
 0x30f   : > { %v5170_v19 = vpop.f32.mrf.mxu0 }
 0x310   : > { %v5192_v52 = vpop.f32.mrf.mxu1  ;;  %v4352_v27 = vadd.f32 %v5190_v26, %v4312_v25 }
 0x329   : > { %v4391_v54 = vpop.f32.mrf.mxu0 }
 0x32a   : > { %v4392_v55 = vadd.f32 %v4391_v54, %v4352_v27 }
 0x32b   : > { %v5221_v29 = vpop.f32.mrf.mxu0 }
 0x32c   : > { %6026 = vrsqrt.f32 %v4392_v55  ;;  %vm4427_vm9 = vcmp.eq.f32.partialorder %v4392_v55, inf  ;;  %v4430_v36 = vand.u32 2147483648, %v4392_v55  ;;  %vm4429_vm10 = vcmp.eq.f32.partialorder %v4392_v55, 0.0 }
 0x32d   : > { %v4394_v32 = vpop.f32.mrf.mxu0 }
 0x32f   : > { %v5222_v33 = vpop.f32.mrf.mxu0 }
 0x339   : > { %v6027_v34 = vpop.eup %6026 }
 0x33a   : > { %v4426_v35 = vmul.f32 %v6027_v34, %v4392_v55 }
 0x33c   : > { %v4428_v37 = vsel %vm4427_vm9, %v4392_v55, %v4426_v35 }
 0x33d   : > { %v4431_v38 = vsel %vm4429_vm10, %v4430_v36, %v4428_v37 }
 0x33e   : > { %4436 = vst [vmem:[%s6390_s17 + $0x20] sm:$0xff] %v4431_v38 }
 0x33f   : > { %6095 = shalt.err (!%p6092_p0)
}
 0x340   : > { %s6096_s28 = scalar_lea.hbm %s6424_s23, 640  ;;  %s6100_s5 = scalar_lea.hbm %s6464_s2, 1280 }
 0x341   : > { %p6097_p11 = scmp.ne.s32.totalorder %s6424_s23, %s6096_s28  ;;  %p6101_p1 = scmp.lt.s32.totalorder %s6424_s23, %s6464_s2 }
 0x342   : > { %p6102_p4 = scmp.lt.s32.totalorder %s6100_s5, %s6096_s28 }
 0x343   : > { %p6098_p9 = pnand %p6097_p11, %p6480_p3 }
 0x344   : > { %p6103_p6 = por %p6102_p4, %p6101_p1 }
 0x345   : > { %p6099_p12 = pneg %p6098_p9 }
 0x347   : > { %p6104_p8 = pnand %p6103_p6, %p6099_p12 }
 0x349   : > { %6107 = shalt.err (!%p6104_p8)
}
 0x34a   : > { %5234 = dma.vmem_to_hbm [thread:$0]  (%p6480_p3), %s4453_s14, 640, %s6424_s23, %s4438_s24  }
 0x34b PF: > { %s4464_s18 = sand.u32 1, %s6138_s9   ;;  %p6481_p5 = scmp.ne.s32.totalorder %s6470_s16, 0 }
 0x34c   : > { %p6482_p7 = scmp.ge.s32.totalorder %s6150_s12, 2  ;;  %s4465_s22 = scalar_lea.sflag [#allocation4], %s4464_s18 }
 0x34e   : > { %p5245_p10 = pnand %p6482_p7, %p6481_p5 }
 0x350   : > { %p5246_p2 = pneg %p5245_p10 }
 0x352   : > { %6133 = dma.done.wait (%p5246_p2), %s4465_s22, 640  }
 0x353   : > { %6135 = vsyncadd (%p5246_p2), %s4465_s22, 4294966656  ;;  %p16_p13 = scmp.ge.s32.totalorder %s6229_s21, 4   ;;  %s6483_s9 = smov %s6142_s10 }
 0x354   : > { %s6484_s10 = smov %s6146_s11  ;;  %s6485_s11 = smov %s6246_s29 }
 0x355   : > { %s6486_s12 = smov %s6229_s21  ;;  %18 = sbr.rel (!%p16_p13) target bundleno = 6 (0x6), region = 77 }
 0x35a   :  { %4470 = vsyncpa [#allocation3], 1 }
 0x35b   :  { %4472 = vsyncpa [#allocation3 + $0x1], 1 }
 0x35c   :  { %4473 = vsyncpa [#allocation6], 1 }
 0x35d   :  { %4474 = vsyncpa [#allocation4], 1 }
 0x35e   :  { %4476 = vsyncpa [#allocation4 + $0x1], 1 }

</bundles_post_ra>
